<compile_context>
chip_gen: v5e
topology: v5e:2x2
jax: 0.10.0
libtpu: 0.0.40
codegen_flags: <defaults>
</compile_context>

<pallas_src>
import jax
import jax.numpy as jnp
from jax.experimental import pallas as pl
from jax.experimental.pallas import tpu as pltpu

BLK = 256                 # node-row block (M) and adj reduction tile (K)
LANE = 128                # lane padding for feature / class dims
MM_DTYPE = jnp.bfloat16   # matmul-input dtype (f32 accumulation via preferred_element_type)


def _round_up(x, m):
    return ((x + m - 1) // m) * m


def _pad2d(a, rows, cols):
    r, c = a.shape
    return jnp.pad(a, ((0, rows - r), (0, cols - c)))


# ---------------------------------------------------------------------------
# Kernel 1:  g = relu((1+eps1)*xW1 + adj @ xW1) @ W2
#   grid = (row blocks, adj column blocks); the column axis is a reduction.
# ---------------------------------------------------------------------------
def _gin_layer1_kernel(eps_ref, adj_ref, xw_ref, w2_ref, g_ref, acc_ref):
    i = pl.program_id(0)
    k = pl.program_id(1)

    @pl.when(k == 0)
    def _():
        acc_ref[...] = jnp.zeros_like(acc_ref)

    # adj tile (bf16) @ xW1 rows (bf16) -> f32 accumulate on the MXU.
    acc_ref[...] += jnp.dot(adj_ref[...], xw_ref[...],
                            preferred_element_type=jnp.float32)

    # GIN self term: the streamed xW1 block at k == i is exactly this row block's rows.
    @pl.when(k == i)
    def _():
        acc_ref[...] += (1.0 + eps_ref[0]) * xw_ref[...].astype(jnp.float32)

    @pl.when(k == pl.num_programs(1) - 1)
    def _():
        h1 = jnp.maximum(acc_ref[...], 0.0)
        g_ref[...] = jnp.dot(h1.astype(MM_DTYPE), w2_ref[...],
                             preferred_element_type=jnp.float32).astype(g_ref.dtype)


# ---------------------------------------------------------------------------
# Kernel 2:  h2 = (1+eps2)*g + adj @ g ; logits = h2 @ Wfc + b ; log_softmax
# ---------------------------------------------------------------------------
def _gin_layer2_head_kernel(eps_ref, adj_ref, g_ref, wfc_ref, bfc_ref, cmask_ref,
                            o_ref, acc_ref):
    i = pl.program_id(0)
    k = pl.program_id(1)

    @pl.when(k == 0)
    def _():
        acc_ref[...] = jnp.zeros_like(acc_ref)

    acc_ref[...] += jnp.dot(adj_ref[...], g_ref[...],
                            preferred_element_type=jnp.float32)

    @pl.when(k == i)
    def _():
        acc_ref[...] += (1.0 + eps_ref[0]) * g_ref[...].astype(jnp.float32)

    @pl.when(k == pl.num_programs(1) - 1)
    def _():
        h2 = acc_ref[...]
        logits = jnp.dot(h2.astype(MM_DTYPE), wfc_ref[...],
                         preferred_element_type=jnp.float32)
        # bias + (-1e30 on padded class lanes) so padding never affects max / exp-sum
        logits = logits + bfc_ref[...] + cmask_ref[...]
        m = jnp.max(logits, axis=-1, keepdims=True)
        shifted = logits - m
        lse = jnp.log(jnp.sum(jnp.exp(shifted), axis=-1, keepdims=True))
        o_ref[...] = (shifted - lse).astype(o_ref.dtype)


# ---------------------------------------------------------------------------
# pallas_call wrappers
# ---------------------------------------------------------------------------
def _layer1_call(adj_p, xw_p, w2_p, eps1, *, compiler_params):
    n_pad = adj_p.shape[0]
    h_pad = xw_p.shape[1]
    h_out = w2_p.shape[1]
    gm = n_pad // BLK
    ce = pl.CostEstimate(
        flops=2 * n_pad * n_pad * h_pad + 2 * n_pad * h_pad * h_out,
        transcendentals=0,
        bytes_accessed=(n_pad * n_pad * 2 + gm * n_pad * h_pad * 2
                        + h_pad * h_out * 2 + n_pad * h_out * 2),
    )
    return pl.pallas_call(
        _gin_layer1_kernel,
        out_shape=jax.ShapeDtypeStruct((n_pad, h_out), MM_DTYPE),
        grid_spec=pltpu.PrefetchScalarGridSpec(
            num_scalar_prefetch=0,
            grid=(gm, gm),
            in_specs=[
                pl.BlockSpec(memory_space=pltpu.MemorySpace.SMEM),   # eps1 (1,) f32 scalar
                pl.BlockSpec((BLK, BLK), lambda i, k: (i, k)),       # adj tile (bf16)
                pl.BlockSpec((BLK, h_pad), lambda i, k: (k, 0)),     # xW1 rows matching adj cols
                pl.BlockSpec((h_pad, h_out), lambda i, k: (0, 0)),   # W2 (kept resident)
            ],
            out_specs=pl.BlockSpec((BLK, h_out), lambda i, k: (i, 0)),
            scratch_shapes=[pltpu.VMEM((BLK, h_pad), jnp.float32)],
        ),
        compiler_params=compiler_params,
        cost_estimate=ce,
    )(eps1, adj_p, xw_p, w2_p)


def _layer2_head_call(adj_p, g_p, wfc_p, bfc_p, cmask, eps2, *, compiler_params):
    n_pad = adj_p.shape[0]
    h_pad = g_p.shape[1]
    c_pad = wfc_p.shape[1]
    gm = n_pad // BLK
    ce = pl.CostEstimate(
        flops=2 * n_pad * n_pad * h_pad + 2 * n_pad * h_pad * c_pad,
        transcendentals=n_pad * c_pad,
        bytes_accessed=(n_pad * n_pad * 2 + gm * n_pad * h_pad * 2
                        + h_pad * c_pad * 2 + n_pad * c_pad * 4),
    )
    return pl.pallas_call(
        _gin_layer2_head_kernel,
        out_shape=jax.ShapeDtypeStruct((n_pad, c_pad), jnp.float32),
        grid_spec=pltpu.PrefetchScalarGridSpec(
            num_scalar_prefetch=0,
            grid=(gm, gm),
            in_specs=[
                pl.BlockSpec(memory_space=pltpu.MemorySpace.SMEM),   # eps2 (1,) f32 scalar
                pl.BlockSpec((BLK, BLK), lambda i, k: (i, k)),       # adj tile (bf16)
                pl.BlockSpec((BLK, h_pad), lambda i, k: (k, 0)),     # g rows matching adj cols
                pl.BlockSpec((h_pad, c_pad), lambda i, k: (0, 0)),   # Wfc (resident)
                pl.BlockSpec((1, c_pad), lambda i, k: (0, 0)),       # bias
                pl.BlockSpec((1, c_pad), lambda i, k: (0, 0)),       # class-pad mask bias
            ],
            out_specs=pl.BlockSpec((BLK, c_pad), lambda i, k: (i, 0)),
            scratch_shapes=[pltpu.VMEM((BLK, h_pad), jnp.float32)],
        ),
        compiler_params=compiler_params,
        cost_estimate=ce,
    )(eps2, adj_p, g_p, wfc_p, bfc_p, cmask)


@jax.jit
def gnn_forward(x, adj, w1, w2, wfc, bfc, eps):
    """x: [N, Fin], adj: [N, N], w1: [Fin, H], w2: [H, H], wfc: [H, C], bfc: [1, C], eps: [2]."""
    n, _ = x.shape
    hdim = w1.shape[1]
    nclass = wfc.shape[1]

    n_pad = _round_up(max(n, BLK), BLK)
    h_pad = _round_up(hdim, LANE)
    c_pad = _round_up(nclass, LANE)

    # Layer reorder: the xW1 projection is done once with a plain XLA matmul
    # (bf16 inputs, f32 accumulate); the kernels only ever stream the narrow operand.
    xw1 = jnp.dot(x.astype(MM_DTYPE), w1.astype(MM_DTYPE),
                  preferred_element_type=jnp.float32)

    # HBM-resident operands stored once as bf16; no adj+eps*I materialization.
    adj_p = _pad2d(adj, n_pad, n_pad).astype(MM_DTYPE)
    xw1_p = _pad2d(xw1, n_pad, h_pad).astype(MM_DTYPE)
    w2_p = _pad2d(w2, h_pad, h_pad).astype(MM_DTYPE)
    wfc_p = _pad2d(wfc, h_pad, c_pad).astype(MM_DTYPE)
    bfc_p = _pad2d(bfc, 1, c_pad).astype(jnp.float32)
    cmask = jnp.where(jnp.arange(c_pad) < nclass, 0.0, -1e30).astype(jnp.float32)[None, :]

    eps1 = eps[0:1].astype(jnp.float32)
    eps2 = eps[1:2].astype(jnp.float32)

    cp = pltpu.CompilerParams(
        # row axis across TensorCores (helps v7x; harmless on v5e/v6e), reduction axis serial.
        # No vmem_limit override: per-step tiles are small and 64 MiB would collide with
        # v7x's physical VMEM.
        dimension_semantics=("parallel", "arbitrary"),
    )

    # layer 1 (fused with the x@W2 projection): g = relu(gc1(x)) @ W2, stored bf16
    g = _layer1_call(adj_p, xw1_p, w2_p, eps1, compiler_params=cp)
    # layer 2 + fc head + log_softmax (fused finalize)
    out_p = _layer2_head_call(adj_p, g, wfc_p, bfc_p, cmask, eps2, compiler_params=cp)
    return out_p[:n, :nclass]


# ---------------------------------------------------------------------------
# References
# ---------------------------------------------------------------------------
def reference_forward_f32(x, adj, w1, w2, wfc, bfc, eps):
    """Pure-JAX f32 reference matching the PyTorch module in eval mode."""
    h1 = (x * (1.0 + eps[0]) + adj @ x) @ w1
    h1 = jnp.maximum(h1, 0.0)
    h2 = (h1 * (1.0 + eps[1]) + adj @ h1) @ w2
    logits = h2 @ wfc + bfc
    return jax.nn.log_softmax(logits, axis=1)


def reference_forward_matched(x, adj, w1, w2, wfc, bfc, eps):
    """Same op order / dtypes as the kernels: bf16 HBM operands, f32 accumulation."""
    bf = lambda a: a.astype(MM_DTYPE)
    mm = lambda a, b: jnp.dot(bf(a), bf(b), preferred_element_type=jnp.float32)
    adj_bf = bf(adj)
    xw1 = bf(mm(x, w1))                                       # stored bf16
    acc1 = (jnp.dot(adj_bf, xw1, preferred_element_type=jnp.float32)
            + (1.0 + eps[0]) * xw1.astype(jnp.float32))
    h1 = jnp.maximum(acc1, 0.0)
    g = bf(mm(h1, w2))                                        # kernel-1 output, stored bf16
    acc2 = (jnp.dot(adj_bf, g, preferred_element_type=jnp.float32)
            + (1.0 + eps[1]) * g.astype(jnp.float32))
    logits = mm(acc2, wfc) + bfc
    return jax.nn.log_softmax(logits, axis=1)


if __name__ == "__main__":
    # Small shapes consistent with the module: N nodes, nfeat -> nhid -> nhid -> nclass.
    N, nfeat, nhid, nclass = 8, 16, 32, 8

    key = jax.random.PRNGKey(0)
    k_x, k_adj, k_w1, k_w2, k_wfc, k_bfc = jax.random.split(key, 6)

    x = jax.random.normal(k_x, (N, nfeat), dtype=jnp.float32)

    # Synthetic mean-normalized adjacency (like normalize_adj with agg='mean', no self-loops).
    a = (jax.random.uniform(k_adj, (N, N)) > 0.5).astype(jnp.float32)
    a = a * (1.0 - jnp.eye(N, dtype=jnp.float32))
    a = jnp.maximum(a, a.T)  # symmetric
    rowsum = jnp.maximum(jnp.sum(a, axis=1, keepdims=True), 1.0)
    adj = a / rowsum

    # Deterministic parameter init (nn.Linear-like uniform), stored as [in, out] (pre-transposed).
    def linear_weight(k, fan_in, fan_out):
        bound = 1.0 / jnp.sqrt(jnp.float32(fan_in))
        return jax.random.uniform(k, (fan_in, fan_out), jnp.float32, -bound, bound)

    w1 = linear_weight(k_w1, nfeat, nhid)     # gc1.weight_x (bias=False)
    w2 = linear_weight(k_w2, nhid, nhid)      # gc2.weight_x (bias=False)
    wfc = linear_weight(k_wfc, nhid, nclass)  # fc.weight
    bfc = jax.random.uniform(
        k_bfc, (1, nclass), jnp.float32,
        -1.0 / jnp.sqrt(jnp.float32(nhid)), 1.0 / jnp.sqrt(jnp.float32(nhid)))  # fc.bias
    eps = jnp.zeros((2,), dtype=jnp.float32)  # gc1.eps, gc2.eps (Parameter(torch.zeros(1)))

    out = gnn_forward(x, adj, w1, w2, wfc, bfc, eps)
    out = jax.block_until_ready(out)
    assert out.shape == (N, nclass)

    # Tight check against a reference doing the exact same bf16-matmul / f32-accum math.
    ref_m = reference_forward_matched(x, adj, w1, w2, wfc, bfc, eps)
    assert jnp.allclose(out, ref_m, atol=2e-4, rtol=2e-4), "mismatch vs bf16-matched reference"

    # Sanity check against the full-f32 PyTorch-equivalent reference (bf16 matmul tolerance).
    ref_f32 = reference_forward_f32(x, adj, w1, w2, wfc, bfc, eps)
    assert jnp.allclose(out, ref_f32, atol=1e-1, rtol=5e-2), "mismatch vs f32 reference"

    print("KERNEL_OK")
</pallas_src>

<mosaic_0001>
module attributes {stable_mosaic.version = 11 : i64} {
  func.func @_gin_layer1_kernel(%arg0: i32, %arg1: i32, %arg2: memref<1xf32, #tpu.memory_space<smem>>, %arg3: memref<256x256xbf16, #tpu.memory_space<vmem>>, %arg4: memref<256x128xbf16, #tpu.memory_space<vmem>>, %arg5: memref<128x128xbf16, #tpu.memory_space<vmem>>, %arg6: memref<256x128xbf16, #tpu.memory_space<vmem>>, %arg7: memref<256x128xf32, #tpu.memory_space<vmem>>) attributes {dimension_semantics = [#tpu.dimension_semantics<parallel>, #tpu.dimension_semantics<arbitrary>], iteration_bounds = array<i64: 1, 1>, scalar_prefetch = 0 : i64, scratch_operands = 1 : i64, tpu.core_type = #tpu.core_type<tc>, window_params = [{transform_indices = @transform_0, window_bounds = array<i64: 1>}, {transform_indices = @transform_1, window_bounds = array<i64: 256, 256>}, {transform_indices = @transform_2, window_bounds = array<i64: 256, 128>}, {pipeline_mode = #tpu.pipeline_mode<synchronous>, transform_indices = @transform_3, window_bounds = array<i64: 128, 128>}, {transform_indices = @transform_4, window_bounds = array<i64: 256, 128>}]} {
    %c0_i32 = arith.constant 0 : i32
    %0 = arith.cmpi eq, %arg1, %c0_i32 : i32
    %1 = arith.extui %0 : i1 to i32
    %c0_i32_0 = arith.constant 0 : i32
    %2 = arith.cmpi ne, %1, %c0_i32_0 : i32
    scf.if %2 {
      %cst_11 = arith.constant 0.000000e+00 : f32
      %15 = vector.broadcast %cst_11 : f32 to vector<256x128xf32>
      %c0_12 = arith.constant 0 : index
      %c0_13 = arith.constant 0 : index
      %16 = vector.load %arg7[%c0_12, %c0_13] : memref<256x128xf32, #tpu.memory_space<vmem>>, vector<256x128xf32>
      tpu.vector_store %arg7[%c0_12, %c0_13], %15 {strides = array<i32>} : memref<256x128xf32, #tpu.memory_space<vmem>>, vector<256x128xf32>,
    } else {
    }
    %c0 = arith.constant 0 : index
    %c0_1 = arith.constant 0 : index
    %3 = vector.load %arg7[%c0, %c0_1] : memref<256x128xf32, #tpu.memory_space<vmem>>, vector<256x128xf32>
    %c0_2 = arith.constant 0 : index
    %c0_3 = arith.constant 0 : index
    %4 = vector.load %arg3[%c0_2, %c0_3] : memref<256x256xbf16, #tpu.memory_space<vmem>>, vector<256x256xbf16>
    %c0_4 = arith.constant 0 : index
    %c0_5 = arith.constant 0 : index
    %5 = vector.load %arg4[%c0_4, %c0_5] : memref<256x128xbf16, #tpu.memory_space<vmem>>, vector<256x128xbf16>
    %cst = arith.constant dense<0.000000e+00> : vector<256x128xf32>
    %6 = tpu.matmul %4, %5, %cst {dimension_numbers = #tpu.dot_dimension_numbers<[1], [0], [0], [1], [0, 0, 1, 1], [], []>} : vector<256x256xbf16>, vector<256x128xbf16>, vector<256x128xf32> -> vector<256x128xf32>
    %7 = arith.addf %3, %6 : vector<256x128xf32>
    %c0_6 = arith.constant 0 : index
    %c0_7 = arith.constant 0 : index
    %8 = vector.load %arg7[%c0_6, %c0_7] : memref<256x128xf32, #tpu.memory_space<vmem>>, vector<256x128xf32>
    tpu.vector_store %arg7[%c0_6, %c0_7], %7 {strides = array<i32>} : memref<256x128xf32, #tpu.memory_space<vmem>>, vector<256x128xf32>,
    %9 = arith.cmpi eq, %arg1, %arg0 : i32
    %10 = arith.extui %9 : i1 to i32
    %c0_i32_8 = arith.constant 0 : i32
    %11 = arith.cmpi ne, %10, %c0_i32_8 : i32
    scf.if %11 {
      %c0_11 = arith.constant 0 : index
      %c0_12 = arith.constant 0 : index
      %15 = vector.load %arg7[%c0_11, %c0_12] : memref<256x128xf32, #tpu.memory_space<vmem>>, vector<256x128xf32>
      %c0_13 = arith.constant 0 : index
      %16 = memref.load %arg2[%c0_13] : memref<1xf32, #tpu.memory_space<smem>>
      %cst_14 = arith.constant 1.000000e+00 : f32
      %17 = arith.addf %cst_14, %16 : f32
      %c0_15 = arith.constant 0 : index
      %c0_16 = arith.constant 0 : index
      %18 = vector.load %arg4[%c0_15, %c0_16] : memref<256x128xbf16, #tpu.memory_space<vmem>>, vector<256x128xbf16>
      %19 = arith.extf %18 : vector<256x128xbf16> to vector<256x128xf32>
      %20 = vector.broadcast %17 : f32 to vector<256x128xf32>
      %21 = arith.mulf %20, %19 : vector<256x128xf32>
      %22 = arith.addf %15, %21 : vector<256x128xf32>
      %c0_17 = arith.constant 0 : index
      %c0_18 = arith.constant 0 : index
      %23 = vector.load %arg7[%c0_17, %c0_18] : memref<256x128xf32, #tpu.memory_space<vmem>>, vector<256x128xf32>
      tpu.vector_store %arg7[%c0_17, %c0_18], %22 {strides = array<i32>} : memref<256x128xf32, #tpu.memory_space<vmem>>, vector<256x128xf32>,
    } else {
    }
    %c0_i32_9 = arith.constant 0 : i32
    %12 = arith.cmpi eq, %arg1, %c0_i32_9 : i32
    %13 = arith.extui %12 : i1 to i32
    %c0_i32_10 = arith.constant 0 : i32
    %14 = arith.cmpi ne, %13, %c0_i32_10 : i32
    scf.if %14 {
      %c0_11 = arith.constant 0 : index
      %c0_12 = arith.constant 0 : index
      %15 = vector.load %arg7[%c0_11, %c0_12] : memref<256x128xf32, #tpu.memory_space<vmem>>, vector<256x128xf32>
      %cst_13 = arith.constant 0.000000e+00 : f32
      %16 = vector.broadcast %cst_13 : f32 to vector<256x128xf32>
      %17 = arith.maximumf %15, %16 : vector<256x128xf32>
      %18 = arith.truncf %17 : vector<256x128xf32> to vector<256x128xbf16>
      %c0_14 = arith.constant 0 : index
      %c0_15 = arith.constant 0 : index
      %19 = vector.load %arg5[%c0_14, %c0_15] : memref<128x128xbf16, #tpu.memory_space<vmem>>, vector<128x128xbf16>
      %cst_16 = arith.constant dense<0.000000e+00> : vector<256x128xf32>
      %20 = tpu.matmul %18, %19, %cst_16 {dimension_numbers = #tpu.dot_dimension_numbers<[1], [0], [0], [1], [0, 0, 1, 1], [], []>} : vector<256x128xbf16>, vector<128x128xbf16>, vector<256x128xf32> -> vector<256x128xf32>
      %21 = arith.truncf %20 : vector<256x128xf32> to vector<256x128xbf16>
      %c0_17 = arith.constant 0 : index
      %c0_18 = arith.constant 0 : index
      %22 = vector.load %arg6[%c0_17, %c0_18] : memref<256x128xbf16, #tpu.memory_space<vmem>>, vector<256x128xbf16>
      tpu.vector_store %arg6[%c0_17, %c0_18], %21 {strides = array<i32>} : memref<256x128xbf16, #tpu.memory_space<vmem>>, vector<256x128xbf16>,
    } else {
    }
    return
  }
  func.func @transform_0(%arg0: i32, %arg1: i32) -> i32 {
    %c0_i32 = arith.constant 0 : i32
    %c0_i32_0 = arith.constant 0 : i32
    return %c0_i32 : i32
  }
  func.func @transform_1(%arg0: i32, %arg1: i32) -> (i32, i32) {
    %c0_i32 = arith.constant 0 : i32
    return %arg0, %arg1 : i32, i32
  }
  func.func @transform_2(%arg0: i32, %arg1: i32) -> (i32, i32) {
    %c0_i32 = arith.constant 0 : i32
    %c0_i32_0 = arith.constant 0 : i32
    return %arg1, %c0_i32 : i32, i32
  }
  func.func @transform_3(%arg0: i32, %arg1: i32) -> (i32, i32) {
    %c0_i32 = arith.constant 0 : i32
    %c0_i32_0 = arith.constant 0 : i32
    %c0_i32_1 = arith.constant 0 : i32
    return %c0_i32, %c0_i32_0 : i32, i32
  }
  func.func @transform_4(%arg0: i32, %arg1: i32) -> (i32, i32) {
    %c0_i32 = arith.constant 0 : i32
    %c0_i32_0 = arith.constant 0 : i32
    return %arg0, %c0_i32 : i32, i32
  }
}

module attributes {stable_mosaic.version = 11 : i64} {
  func.func @_gin_layer2_head_kernel(%arg0: i32, %arg1: i32, %arg2: memref<1xf32, #tpu.memory_space<smem>>, %arg3: memref<256x256xbf16, #tpu.memory_space<vmem>>, %arg4: memref<256x128xbf16, #tpu.memory_space<vmem>>, %arg5: memref<128x128xbf16, #tpu.memory_space<vmem>>, %arg6: memref<1x128xf32, #tpu.memory_space<vmem>>, %arg7: memref<1x128xf32, #tpu.memory_space<vmem>>, %arg8: memref<256x128xf32, #tpu.memory_space<vmem>>, %arg9: memref<256x128xf32, #tpu.memory_space<vmem>>) attributes {dimension_semantics = [#tpu.dimension_semantics<parallel>, #tpu.dimension_semantics<arbitrary>], iteration_bounds = array<i64: 1, 1>, scalar_prefetch = 0 : i64, scratch_operands = 1 : i64, tpu.core_type = #tpu.core_type<tc>, window_params = [{transform_indices = @transform_0, window_bounds = array<i64: 1>}, {transform_indices = @transform_1, window_bounds = array<i64: 256, 256>}, {transform_indices = @transform_2, window_bounds = array<i64: 256, 128>}, {pipeline_mode = #tpu.pipeline_mode<synchronous>, transform_indices = @transform_3, window_bounds = array<i64: 128, 128>}, {pipeline_mode = #tpu.pipeline_mode<synchronous>, transform_indices = @transform_4, window_bounds = array<i64: 1, 128>}, {pipeline_mode = #tpu.pipeline_mode<synchronous>, transform_indices = @transform_5, window_bounds = array<i64: 1, 128>}, {transform_indices = @transform_6, window_bounds = array<i64: 256, 128>}]} {
    %c0_i32 = arith.constant 0 : i32
    %0 = arith.cmpi eq, %arg1, %c0_i32 : i32
    %1 = arith.extui %0 : i1 to i32
    %c0_i32_0 = arith.constant 0 : i32
    %2 = arith.cmpi ne, %1, %c0_i32_0 : i32
    scf.if %2 {
      %cst_11 = arith.constant 0.000000e+00 : f32
      %15 = vector.broadcast %cst_11 : f32 to vector<256x128xf32>
      %c0_12 = arith.constant 0 : index
      %c0_13 = arith.constant 0 : index
      %16 = vector.load %arg9[%c0_12, %c0_13] : memref<256x128xf32, #tpu.memory_space<vmem>>, vector<256x128xf32>
      tpu.vector_store %arg9[%c0_12, %c0_13], %15 {strides = array<i32>} : memref<256x128xf32, #tpu.memory_space<vmem>>, vector<256x128xf32>,
    } else {
    }
    %c0 = arith.constant 0 : index
    %c0_1 = arith.constant 0 : index
    %3 = vector.load %arg9[%c0, %c0_1] : memref<256x128xf32, #tpu.memory_space<vmem>>, vector<256x128xf32>
    %c0_2 = arith.constant 0 : index
    %c0_3 = arith.constant 0 : index
    %4 = vector.load %arg3[%c0_2, %c0_3] : memref<256x256xbf16, #tpu.memory_space<vmem>>, vector<256x256xbf16>
    %c0_4 = arith.constant 0 : index
    %c0_5 = arith.constant 0 : index
    %5 = vector.load %arg4[%c0_4, %c0_5] : memref<256x128xbf16, #tpu.memory_space<vmem>>, vector<256x128xbf16>
    %cst = arith.constant dense<0.000000e+00> : vector<256x128xf32>
    %6 = tpu.matmul %4, %5, %cst {dimension_numbers = #tpu.dot_dimension_numbers<[1], [0], [0], [1], [0, 0, 1, 1], [], []>} : vector<256x256xbf16>, vector<256x128xbf16>, vector<256x128xf32> -> vector<256x128xf32>
    %7 = arith.addf %3, %6 : vector<256x128xf32>
    %c0_6 = arith.constant 0 : index
    %c0_7 = arith.constant 0 : index
    %8 = vector.load %arg9[%c0_6, %c0_7] : memref<256x128xf32, #tpu.memory_space<vmem>>, vector<256x128xf32>
    tpu.vector_store %arg9[%c0_6, %c0_7], %7 {strides = array<i32>} : memref<256x128xf32, #tpu.memory_space<vmem>>, vector<256x128xf32>,
    %9 = arith.cmpi eq, %arg1, %arg0 : i32
    %10 = arith.extui %9 : i1 to i32
    %c0_i32_8 = arith.constant 0 : i32
    %11 = arith.cmpi ne, %10, %c0_i32_8 : i32
    scf.if %11 {
      %c0_11 = arith.constant 0 : index
      %c0_12 = arith.constant 0 : index
      %15 = vector.load %arg9[%c0_11, %c0_12] : memref<256x128xf32, #tpu.memory_space<vmem>>, vector<256x128xf32>
      %c0_13 = arith.constant 0 : index
      %16 = memref.load %arg2[%c0_13] : memref<1xf32, #tpu.memory_space<smem>>
      %cst_14 = arith.constant 1.000000e+00 : f32
      %17 = arith.addf %cst_14, %16 : f32
      %c0_15 = arith.constant 0 : index
      %c0_16 = arith.constant 0 : index
      %18 = vector.load %arg4[%c0_15, %c0_16] : memref<256x128xbf16, #tpu.memory_space<vmem>>, vector<256x128xbf16>
      %19 = arith.extf %18 : vector<256x128xbf16> to vector<256x128xf32>
      %20 = vector.broadcast %17 : f32 to vector<256x128xf32>
      %21 = arith.mulf %20, %19 : vector<256x128xf32>
      %22 = arith.addf %15, %21 : vector<256x128xf32>
      %c0_17 = arith.constant 0 : index
      %c0_18 = arith.constant 0 : index
      %23 = vector.load %arg9[%c0_17, %c0_18] : memref<256x128xf32, #tpu.memory_space<vmem>>, vector<256x128xf32>
      tpu.vector_store %arg9[%c0_17, %c0_18], %22 {strides = array<i32>} : memref<256x128xf32, #tpu.memory_space<vmem>>, vector<256x128xf32>,
    } else {
    }
    %c0_i32_9 = arith.constant 0 : i32
    %12 = arith.cmpi eq, %arg1, %c0_i32_9 : i32
    %13 = arith.extui %12 : i1 to i32
    %c0_i32_10 = arith.constant 0 : i32
    %14 = arith.cmpi ne, %13, %c0_i32_10 : i32
    scf.if %14 {
      %c0_11 = arith.constant 0 : index
      %c0_12 = arith.constant 0 : index
      %15 = vector.load %arg9[%c0_11, %c0_12] : memref<256x128xf32, #tpu.memory_space<vmem>>, vector<256x128xf32>
      %16 = arith.truncf %15 : vector<256x128xf32> to vector<256x128xbf16>
      %c0_13 = arith.constant 0 : index
      %c0_14 = arith.constant 0 : index
      %17 = vector.load %arg5[%c0_13, %c0_14] : memref<128x128xbf16, #tpu.memory_space<vmem>>, vector<128x128xbf16>
      %cst_15 = arith.constant dense<0.000000e+00> : vector<256x128xf32>
      %18 = tpu.matmul %16, %17, %cst_15 {dimension_numbers = #tpu.dot_dimension_numbers<[1], [0], [0], [1], [0, 0, 1, 1], [], []>} : vector<256x128xbf16>, vector<128x128xbf16>, vector<256x128xf32> -> vector<256x128xf32>
      %c0_16 = arith.constant 0 : index
      %c0_17 = arith.constant 0 : index
      %19 = vector.load %arg6[%c0_16, %c0_17] : memref<1x128xf32, #tpu.memory_space<vmem>>, vector<1x128xf32>
      %20 = vector.broadcast %19 : vector<1x128xf32> to vector<256x128xf32>
      %21 = arith.addf %18, %20 : vector<256x128xf32>
      %c0_18 = arith.constant 0 : index
      %c0_19 = arith.constant 0 : index
      %22 = vector.load %arg7[%c0_18, %c0_19] : memref<1x128xf32, #tpu.memory_space<vmem>>, vector<1x128xf32>
      %23 = vector.broadcast %22 : vector<1x128xf32> to vector<256x128xf32>
      %24 = arith.addf %21, %23 : vector<256x128xf32>
      %cst_20 = arith.constant dense<0xFF800000> : vector<256xf32>
      %25 = vector.multi_reduction <maximumf>, %24, %cst_20 [1] : vector<256x128xf32> to vector<256xf32>
      %26 = vector.shape_cast %25 : vector<256xf32> to vector<256x1xf32>
      %27 = vector.broadcast %26 : vector<256x1xf32> to vector<256x128xf32>
      %28 = arith.subf %24, %27 : vector<256x128xf32>
      %29 = math.exp %28 : vector<256x128xf32>
      %cst_21 = arith.constant dense<0.000000e+00> : vector<256xf32>
      %30 = vector.multi_reduction <add>, %29, %cst_21 [1] : vector<256x128xf32> to vector<256xf32>
      %31 = vector.shape_cast %30 : vector<256xf32> to vector<256x1xf32>
      %32 = math.log %31 : vector<256x1xf32>
      %33 = vector.broadcast %32 : vector<256x1xf32> to vector<256x128xf32>
      %34 = arith.subf %28, %33 : vector<256x128xf32>
      %c0_22 = arith.constant 0 : index
      %c0_23 = arith.constant 0 : index
      %35 = vector.load %arg8[%c0_22, %c0_23] : memref<256x128xf32, #tpu.memory_space<vmem>>, vector<256x128xf32>
      tpu.vector_store %arg8[%c0_22, %c0_23], %34 {strides = array<i32>} : memref<256x128xf32, #tpu.memory_space<vmem>>, vector<256x128xf32>,
    } else {
    }
    return
  }
  func.func @transform_0(%arg0: i32, %arg1: i32) -> i32 {
    %c0_i32 = arith.constant 0 : i32
    %c0_i32_0 = arith.constant 0 : i32
    return %c0_i32 : i32
  }
  func.func @transform_1(%arg0: i32, %arg1: i32) -> (i32, i32) {
    %c0_i32 = arith.constant 0 : i32
    return %arg0, %arg1 : i32, i32
  }
  func.func @transform_2(%arg0: i32, %arg1: i32) -> (i32, i32) {
    %c0_i32 = arith.constant 0 : i32
    %c0_i32_0 = arith.constant 0 : i32
    return %arg1, %c0_i32 : i32, i32
  }
  func.func @transform_3(%arg0: i32, %arg1: i32) -> (i32, i32) {
    %c0_i32 = arith.constant 0 : i32
    %c0_i32_0 = arith.constant 0 : i32
    %c0_i32_1 = arith.constant 0 : i32
    return %c0_i32, %c0_i32_0 : i32, i32
  }
  func.func @transform_4(%arg0: i32, %arg1: i32) -> (i32, i32) {
    %c0_i32 = arith.constant 0 : i32
    %c0_i32_0 = arith.constant 0 : i32
    %c0_i32_1 = arith.constant 0 : i32
    return %c0_i32, %c0_i32_0 : i32, i32
  }
  func.func @transform_5(%arg0: i32, %arg1: i32) -> (i32, i32) {
    %c0_i32 = arith.constant 0 : i32
    %c0_i32_0 = arith.constant 0 : i32
    %c0_i32_1 = arith.constant 0 : i32
    return %c0_i32, %c0_i32_0 : i32, i32
  }
  func.func @transform_6(%arg0: i32, %arg1: i32) -> (i32, i32) {
    %c0_i32 = arith.constant 0 : i32
    %c0_i32_0 = arith.constant 0 : i32
    return %arg0, %c0_i32 : i32, i32
  }
}

</mosaic_0001>

<bundles_post_ra>
// kernel: gnn_forward.2
= control target key start
LH: loop header
LB: loop body
LE: loop exit
PB: predicated region body
PF: predicated region fallthrough
CT: control target
= control target key end

     0   :  { %s2075_s2 = inlined_call_operand.vmem [shape: bf16[256,128], index: 2, kind: input, shape index: {}]   ;;  %s2076_s1 = inlined_call_operand.vmem [shape: bf16[256,256], index: 1, kind: input, shape index: {}]   ;;  %s2077_s3 = inlined_call_operand.vmem [shape: bf16[128,128], index: 3, kind: input, shape index: {}]   ;;  %s2078_s0 = inlined_call_operand.<no memory space> [shape: f32[1], index: 0, kind: input, shape index: {}]   ;;  %s2079_s4 = inlined_call_operand.vmem [shape: bf16[256,128], index: 4, kind: output, shape index: {}]  }
   0x1   :  { %v1414_v0 = vld [vmem:[%s2075_s2 + $0x38] sm:$0xff]  ;;  %v1413_v2 = vld [vmem:[%s2075_s2 + $0x30] sm:$0xff]  ;;  %v1412_v4 = vld [vmem:[%s2075_s2 + $0x28] sm:$0xff]  ;;  %s685_s12 = sadd.f32 1.0, %s2078_s0 }
   0x2   :  { %v1422_v1 = vld [vmem:[%s2075_s2 + $0x78] sm:$0xff]  ;;  %406 = vmatpush.bf16.msra.mxu0 %v1414_v0  ;;  %1605 = vmatpush.bf16.msra.mxu3 %v1414_v0  ;;  %v1421_v3 = vld [vmem:[%s2075_s2 + $0x70] sm:$0xff]  ;;  %v1420_v5 = vld [vmem:[%s2075_s2 + $0x68] sm:$0xff] }
   0x3   :  { %495 = vmatpush.bf16.msra.mxu1 %v1422_v1  ;;  %v1411_v6 = vld [vmem:[%s2075_s2 + $0x20] sm:$0xff]  ;;  %v1410_v8 = vld [vmem:[%s2075_s2 + $0x18] sm:$0xff]  ;;  %v1409_v10 = vld [vmem:[%s2075_s2 + $0x10] sm:$0xff] }
   0x4   :  { %v1419_v7 = vld [vmem:[%s2075_s2 + $0x60] sm:$0xff]  ;;  %v1418_v9 = vld [vmem:[%s2075_s2 + $0x58] sm:$0xff]  ;;  %v1417_v11 = vld [vmem:[%s2075_s2 + $0x50] sm:$0xff] }
   0x5   :  { %v1408_v12 = vld [vmem:[%s2075_s2 + $0x8] sm:$0xff]  ;;  %v1407_v14 = vld [vmem:[%s2075_s2] sm:$0xff]  ;;  %v1161_v25 = vld [vmem:[%s2076_s1 + $0x10] sm:$0xf] }
   0x6   :  { %407 = vmatpush.bf16.msra.mxu0 %v1413_v2  ;;  %1606 = vmatpush.bf16.msra.mxu3 %v1413_v2  ;;  %v1416_v13 = vld [vmem:[%s2075_s2 + $0x48] sm:$0xff]  ;;  %v1153_v15 = vld [vmem:[%s2076_s1] sm:$0xf]  ;;  %v1375_v20 = vld [vmem:[%s2076_s1 + $0x4] sm:$0xf] }
   0x7   :  { %496 = vmatpush.bf16.msra.mxu1 %v1421_v3  ;;  %v1376_v16 = vld [vmem:[%s2076_s1 + $0x4] sm:$0xf0]  ;;  %v1249_v17 = vld [vmem:[%s2076_s1 + $0xc0] sm:$0xf]  ;;  %v1155_v21 = vld [vmem:[%s2076_s1 + $0x8] sm:$0xf0] }
   0x8   :  { %v1400_v18 = vld [vmem:[%s2076_s1 + $0xc4] sm:$0xf0]  ;;  %v1415_v19 = vld [vmem:[%s2075_s2 + $0x40] sm:$0xff]  ;;  %v1154_v22 = vor.u32 %v1376_v16, %v1153_v15  ;;  %v1158_v24 = vor.u32 %v1375_v20, %v1155_v21  ;;  %v1378_v26 = vld [vmem:[%s2076_s1 + $0x14] sm:$0xf0] }
   0x9   :  { %v1250_v23 = vor.u32 %v1400_v18, %v1249_v17  ;;  %v1257_v27 = vld [vmem:[%s2076_s1 + $0xd0] sm:$0xf]  ;;  %v1402_v28 = vld [vmem:[%s2076_s1 + $0xd4] sm:$0xf0]  ;;  %v1377_v29 = vld [vmem:[%s2076_s1 + $0x14] sm:$0xf]  ;;  %v1162_v31 = vor.u32 %v1378_v26, %v1161_v25 }
   0xa   :  { %408 = vmatpush.bf16.msra.mxu0 %v1412_v4  ;;  %1607 = vmatpush.bf16.msra.mxu3 %v1412_v4  ;;  %v1163_v30 = vld [vmem:[%s2076_s1 + $0x18] sm:$0xf0]  ;;  %v1258_v32 = vor.u32 %v1402_v28, %v1257_v27  ;;  %v1169_v34 = vld [vmem:[%s2076_s1 + $0x20] sm:$0xf]  ;;  %v1380_v35 = vld [vmem:[%s2076_s1 + $0x24] sm:$0xf0] }
   0xb   :  { %497 = vmatpush.bf16.msra.mxu1 %v1420_v5  ;;  %v1166_v33 = vor.u32 %v1377_v29, %v1163_v30  ;;  %v1265_v36 = vld [vmem:[%s2076_s1 + $0xe0] sm:$0xf]  ;;  %v1404_v37 = vld [vmem:[%s2076_s1 + $0xe4] sm:$0xf0]  ;;  %v1379_v38 = vld [vmem:[%s2076_s1 + $0x24] sm:$0xf]  ;;  %v1170_v40 = vor.u32 %v1380_v35, %v1169_v34 }
   0xc   :  { %v1171_v39 = vld [vmem:[%s2076_s1 + $0x28] sm:$0xf0]  ;;  %v1266_v41 = vor.u32 %v1404_v37, %v1265_v36  ;;  %v1177_v43 = vld [vmem:[%s2076_s1 + $0x30] sm:$0xf]  ;;  %v1382_v44 = vld [vmem:[%s2076_s1 + $0x34] sm:$0xf0] }
   0xd   :  { %v1174_v42 = vor.u32 %v1379_v38, %v1171_v39  ;;  %v1273_v45 = vld [vmem:[%s2076_s1 + $0xf0] sm:$0xf]  ;;  %v1406_v46 = vld [vmem:[%s2076_s1 + $0xf4] sm:$0xf0]  ;;  %v1381_v47 = vld [vmem:[%s2076_s1 + $0x34] sm:$0xf]  ;;  %v1178_v49 = vor.u32 %v1382_v44, %v1177_v43 }
   0xe   :  { %409 = vmatpush.bf16.msra.mxu0 %v1411_v6  ;;  %1608 = vmatpush.bf16.msra.mxu3 %v1411_v6  ;;  %v1179_v48 = vld [vmem:[%s2076_s1 + $0x38] sm:$0xf0]  ;;  %v1274_v50 = vor.u32 %v1406_v46, %v1273_v45  ;;  %v1185_v52 = vld [vmem:[%s2076_s1 + $0x40] sm:$0xf]  ;;  %v1384_v53 = vld [vmem:[%s2076_s1 + $0x44] sm:$0xf0] }
   0xf   :  { %498 = vmatpush.bf16.msra.mxu1 %v1419_v7  ;;  %v1182_v51 = vor.u32 %v1381_v47, %v1179_v48  ;;  %v1399_v54 = vld [vmem:[%s2076_s1 + $0xc4] sm:$0xf]  ;;  %v1251_v55 = vld [vmem:[%s2076_s1 + $0xc8] sm:$0xf0]  ;;  %v1186_v58 = vor.u32 %v1384_v53, %v1185_v52  ;;  %v1430_v61 = vld [vmem:[%s2077_s3 + $0x38] sm:$0xff] }
  0x10   :  { %v1383_v56 = vld [vmem:[%s2076_s1 + $0x44] sm:$0xf]  ;;  %v1187_v57 = vld [vmem:[%s2076_s1 + $0x48] sm:$0xf0]  ;;  %v1254_v59 = vor.u32 %v1399_v54, %v1251_v55  ;;  %994 = vmatpush.bf16.msra.mxu2 %v1430_v61  ;;  %v1193_v62 = vld [vmem:[%s2076_s1 + $0x50] sm:$0xf] }
  0x11   :  { %v1190_v60 = vor.u32 %v1383_v56, %v1187_v57  ;;  %v1386_v63 = vld [vmem:[%s2076_s1 + $0x54] sm:$0xf0]  ;;  %v1401_v0 = vld [vmem:[%s2076_s1 + $0xd4] sm:$0xf]  ;;  %v1203_v15 = vld [vmem:[%s2076_s1 + $0x68] sm:$0xf0] }
  0x12   :  { %410 = vmatpush.bf16.msra.mxu0 %v1410_v8  ;;  %1609 = vmatpush.bf16.msra.mxu3 %v1410_v8  ;;  %v1385_v2 = vld [vmem:[%s2076_s1 + $0x54] sm:$0xf]  ;;  %v1194_v4 = vor.u32 %v1386_v63, %v1193_v62  ;;  %v1428_v8 = vld [vmem:[%s2077_s3 + $0x28] sm:$0xff]  ;;  %v1275_v25 = vld [vmem:[%s2076_s1 + $0xf8] sm:$0xf0] }
  0x13   :  { %499 = vmatpush.bf16.msra.mxu1 %v1418_v9  ;;  %v1425_v20 = vld [vmem:[%s2077_s3 + $0x10] sm:$0xff]  ;;  %v1424_v21 = vld [vmem:[%s2077_s3 + $0x8] sm:$0xff]  ;;  %v1211_v27 = vld [vmem:[%s2076_s1 + $0x78] sm:$0xf0] }
  0x14   :  { %v1389_v26 = vld [vmem:[%s2076_s1 + $0x74] sm:$0xf]  ;;  %v1423_v28 = vld [vmem:[%s2077_s3] sm:$0xff]  ;;  %v1219_v35 = vld [vmem:[%s2076_s1 + $0x88] sm:$0xf0] }
  0x15   :  { %v1391_v34 = vld [vmem:[%s2076_s1 + $0x84] sm:$0xf]  ;;  %v1225_v53 = vld [vmem:[%s2076_s1 + $0x90] sm:$0xf]  ;;  %v1394_v54 = vld [vmem:[%s2076_s1 + $0x94] sm:$0xf0] }
  0x16   :  { %411 = vmatpush.bf16.msra.mxu0 %v1409_v10  ;;  %1610 = vmatpush.bf16.msra.mxu3 %v1409_v10  ;;  %v1201_v10 = vld [vmem:[%s2076_s1 + $0x60] sm:$0xf]  ;;  %v1222_v39 = vor.u32 %v1391_v34, %v1219_v35  ;;  %v1393_v55 = vld [vmem:[%s2076_s1 + $0x94] sm:$0xf]  ;;  %v1227_v56 = vld [vmem:[%s2076_s1 + $0x98] sm:$0xf0] }
  0x17   :  { %500 = vmatpush.bf16.msra.mxu1 %v1417_v11  ;;  %v1432_v36 = vld [vmem:[%s2075_s2] sm:$0xff]  }
  0x18   :  { %v1434_v43 = vunpack.c.h.bf16 %v1432_v36 }
  0x1a   :  { %412 = vmatpush.bf16.msra.mxu0 %v1408_v12  ;;  %1611 = vmatpush.bf16.msra.mxu3 %v1408_v12  ;;  %v1403_v12 = vld [vmem:[%s2076_s1 + $0xe4] sm:$0xf] }
  0x1b   :  { %501 = vmatpush.bf16.msra.mxu1 %v1416_v13 }
  0x1e   :  { %413 = vmatpush.bf16.msra.mxu0 %v1407_v14  ;;  %1612 = vmatpush.bf16.msra.mxu3 %v1407_v14  ;;  %v1387_v14 = vld [vmem:[%s2076_s1 + $0x64] sm:$0xf] }
  0x1f   :  { %502 = vmatpush.bf16.msra.mxu1 %v1415_v19  ;;  %v1206_v18 = vor.u32 %v1387_v14, %v1203_v15  ;;  %v1396_v14 = vld [vmem:[%s2076_s1 + $0xa4] sm:$0xf0]  ;;  %v1395_v15 = vld [vmem:[%s2076_s1 + $0xa4] sm:$0xf] }
  0x21   :  { %414 = vmatmul.bf16.vlgmr.msra.gmra.mxu0 %v1154_v22  ;;  %474 = vmatmul.bf16.vlgmr.msra.gmra.mxu3 %v1250_v23  ;;  %v1209_v22 = vld [vmem:[%s2076_s1 + $0x70] sm:$0xf]  ;;  %v1390_v23 = vld [vmem:[%s2076_s1 + $0x74] sm:$0xf0] }
  0x22   :  { %1613 = vmatpush.bf16.msrb.mxu3 %v1422_v1  ;;  %503 = vmatmul.bf16.vlgmr.msra.gmra.mxu1 %v1158_v24  ;;  %v1259_v1 = vld [vmem:[%s2076_s1 + $0xd8] sm:$0xf0]  ;;  %v1405_v24 = vld [vmem:[%s2076_s1 + $0xf4] sm:$0xf]  ;;  %v1210_v29 = vor.u32 %v1390_v23, %v1209_v22 }
  0x23   :  { %v1278_v30 = vor.u32 %v1405_v24, %v1275_v25 }
  0x26   :  { %1614 = vmatpush.bf16.msrb.mxu3 %v1421_v3  ;;  %v1195_v3 = vld [vmem:[%s2076_s1 + $0x58] sm:$0xf0] }
  0x27   :  { %v1198_v6 = vor.u32 %v1385_v2, %v1195_v3 }
  0x2a   :  { %1615 = vmatpush.bf16.msrb.mxu3 %v1420_v5  ;;  %v1262_v5 = vor.u32 %v1401_v0, %v1259_v1  ;;  %v1230_v0 = vor.u32 %v1393_v55, %v1227_v56 }
  0x2e   :  { %1616 = vmatpush.bf16.msrb.mxu3 %v1419_v7  ;;  %v1429_v7 = vld [vmem:[%s2077_s3 + $0x30] sm:$0xff] }
  0x2f   :  { %995 = vmatpush.bf16.msra.mxu2 %v1429_v7 }
  0x31   :  { %419 = vmatmul.bf16.gmra.mxu0 %v1162_v31  ;;  %479 = vmatmul.bf16.gmra.mxu3 %v1258_v32  ;;  %v1214_v31 = vor.u32 %v1389_v26, %v1211_v27  ;;  %v1217_v32 = vld [vmem:[%s2076_s1 + $0x80] sm:$0xf] }
  0x32   :  { %1617 = vmatpush.bf16.msrb.mxu3 %v1418_v9  ;;  %508 = vmatmul.bf16.gmra.mxu1 %v1166_v33  ;;  %v1427_v9 = vld [vmem:[%s2077_s3 + $0x20] sm:$0xff]  ;;  %v1392_v33 = vld [vmem:[%s2076_s1 + $0x84] sm:$0xf0] }
  0x33   :  { %996 = vmatpush.bf16.msra.mxu2 %v1428_v8  ;;  %v1218_v37 = vor.u32 %v1392_v33, %v1217_v32 }
  0x36   :  { %1618 = vmatpush.bf16.msrb.mxu3 %v1417_v11  ;;  %v1388_v11 = vld [vmem:[%s2076_s1 + $0x64] sm:$0xf0] }
  0x37   :  { %997 = vmatpush.bf16.msra.mxu2 %v1427_v9  ;;  %v1202_v16 = vor.u32 %v1388_v11, %v1201_v10 }
  0x3a   :  { %1619 = vmatpush.bf16.msrb.mxu3 %v1416_v13  ;;  %v1267_v13 = vld [vmem:[%s2076_s1 + $0xe8] sm:$0xf0] }
  0x3b   :  { %v1270_v17 = vor.u32 %v1403_v12, %v1267_v13  ;;  %v1233_v13 = vld [vmem:[%s2076_s1 + $0xa0] sm:$0xf] }
  0x3e   :  { %1620 = vmatpush.bf16.msrb.mxu3 %v1415_v19  ;;  %v1426_v19 = vld [vmem:[%s2077_s3 + $0x18] sm:$0xff] }
  0x3f   :  { %998 = vmatpush.bf16.msra.mxu2 %v1426_v19 }
  0x41   :  { %424 = vmatmul.bf16.gmra.mxu0 %v1170_v40  ;;  %484 = vmatmul.bf16.gmra.mxu3 %v1266_v41  ;;  %v1433_v41 = vunpack.c.l.bf16 %v1432_v36 }
  0x42   :  { %513 = vmatmul.bf16.gmra.mxu1 %v1174_v42  ;;  %1621 = vmatpush.bf16.msra.mxu3 %v1430_v61  ;;  %v1888_v42 = vstv %s685_s12  ;;  %v1226_v61 = vor.u32 %v1394_v54, %v1225_v53 }
  0x43   :  { %999 = vmatpush.bf16.msra.mxu2 %v1425_v20  ;;  %v751_v45 = vmul.f32 %v1433_v41, %v1888_v42  ;;  %v752_v48 = vmul.f32 %v1434_v43, %v1888_v42 }
  0x46   :  { %1622 = vmatpush.bf16.msra.mxu3 %v1429_v7 }
  0x47   :  { %1000 = vmatpush.bf16.msra.mxu2 %v1424_v21 }
  0x4a   :  { %1623 = vmatpush.bf16.msra.mxu3 %v1428_v8 }
  0x4b   :  { %1001 = vmatpush.bf16.msra.mxu2 %v1423_v28 }
  0x4e   :  { %1624 = vmatpush.bf16.msra.mxu3 %v1427_v9 }
  0x51   :  { %429 = vmatmul.bf16.gmra.mxu0 %v1178_v49  ;;  %489 = vmatmul.bf16.gmra.mxu3 %v1274_v50 }
  0x52   :  { %518 = vmatmul.bf16.gmra.mxu1 %v1182_v51  ;;  %1625 = vmatpush.bf16.msra.mxu3 %v1426_v19 }
  0x56   :  { %1626 = vmatpush.bf16.msra.mxu3 %v1425_v20  ;;  %v1576_v20 = vld [vmem:[%s2075_s2 + $0x10] sm:$0xff]  }
  0x57   :  { %v1441_v26 = vunpack.c.l.bf16 %v1576_v20  ;;  %v1442_v27 = vunpack.c.h.bf16 %v1576_v20 }
  0x59   :  { %v756_v32 = vmul.f32 %v1442_v27, %v1888_v42 }
  0x5a   :  { %1627 = vmatpush.bf16.msra.mxu3 %v1424_v21  ;;  %v1234_v21 = vor.u32 %v1396_v14, %v1233_v13 }
  0x5e   :  { %1628 = vmatpush.bf16.msra.mxu3 %v1423_v28 }
  0x61   :  { %434 = vmatmul.bf16.gmra.mxu0 %v1186_v58  ;;  %563 = vmatmul.bf16.vlgmr.msrb.gmra.mxu3 %v1254_v59 }
  0x62   :  { %523 = vmatmul.bf16.gmra.mxu1 %v1190_v60  ;;  %v1575_v60 = vld [vmem:[%s2075_s2 + $0x8] sm:$0xff]  }
  0x63   :  { %v1437_v2 = vunpack.c.l.bf16 %v1575_v60  ;;  %v1438_v3 = vunpack.c.h.bf16 %v1575_v60 }
  0x65   :  { %v754_v8 = vmul.f32 %v1438_v3, %v1888_v42  ;;  %v1578_v3 = vld [vmem:[%s2075_s2 + $0x20] sm:$0xff]  }
  0x71   :  { %439 = vmatmul.bf16.gmra.mxu0 %v1194_v4  ;;  %568 = vmatmul.bf16.gmra.mxu3 %v1262_v5  ;;  %v753_v5 = vmul.f32 %v1437_v2, %v1888_v42 }
  0x72   :  { %528 = vmatmul.bf16.gmra.mxu1 %v1198_v6 }
  0x81   :  { %444 = vmatmul.bf16.gmra.mxu0 %v1202_v16  ;;  %573 = vmatmul.bf16.gmra.mxu3 %v1270_v17  ;;  %v1235_v16 = vld [vmem:[%s2076_s1 + $0xa8] sm:$0xf0] }
  0x82   :  { %533 = vmatmul.bf16.gmra.mxu1 %v1206_v18  ;;  %v1238_v24 = vor.u32 %v1395_v15, %v1235_v16 }
  0x91   :  { %449 = vmatmul.bf16.gmra.mxu0 %v1210_v29  ;;  %578 = vmatmul.bf16.gmra.mxu3 %v1278_v30  ;;  %v755_v29 = vmul.f32 %v1441_v26, %v1888_v42 }
  0x92   :  { %538 = vmatmul.bf16.gmra.mxu1 %v1214_v31 }
  0x9e   :  { %v415_v38 = vpop.f32.mrf.mxu0 }
  0x9f   :  { %v504_v40 = vpop.f32.mrf.mxu1 }
  0xa0   :  { %v505_v44 = vadd.f32 %v504_v40, %v415_v38  ;;  %v1398_v38 = vld [vmem:[%s2076_s1 + $0xb4] sm:$0xf0]  ;;  %v1243_v40 = vld [vmem:[%s2076_s1 + $0xb8] sm:$0xf0] }
  0xa1   :  { %454 = vmatmul.bf16.gmra.mxu0 %v1218_v37  ;;  %v1241_v37 = vld [vmem:[%s2076_s1 + $0xb0] sm:$0xf] }
  0xa2   :  { %543 = vmatmul.bf16.gmra.mxu1 %v1222_v39  ;;  %v783_v50 = vadd.f32 %v751_v45, %v505_v44  ;;  %v1397_v39 = vld [vmem:[%s2076_s1 + $0xb4] sm:$0xf]  ;;  %v1577_v45 = vld [vmem:[%s2075_s2 + $0x18] sm:$0xff]  }
  0xa3   :  { %v1446_v53 = vunpack.c.h.bf16 %v1577_v45 }
  0xa4   :  { %v1891_v46 = vpop.f32.mrf.mxu3  ;;  %v882_v57 = vmax.f32 %v783_v50, 0.0  ;;  %v1246_v50 = vor.u32 %v1397_v39, %v1243_v40  ;;  %v1587_v39 = vld [vmem:[%s2075_s2 + $0x68] sm:$0xff]  }
  0xa6   :  { %v417_v47 = vpop.f32.mrf.mxu0 }
  0xa7   :  { %v506_v49 = vpop.f32.mrf.mxu1 }
  0xa8   :  { %v507_v51 = vadd.f32 %v506_v49, %v417_v47  ;;  %v1242_v47 = vor.u32 %v1398_v38, %v1241_v37 }
  0xaa   :  { %v784_v52 = vadd.f32 %v752_v48, %v507_v51 }
  0xac   :  { %v883_v58 = vmax.f32 %v784_v52, 0.0  ;;  %v1906_v59 = vpop.f32.mrf.mxu3  ;;  %v1445_v52 = vunpack.c.l.bf16 %v1577_v45 }
  0xae   :  { %v420_v62 = vpop.f32.mrf.mxu0  ;;  %v914_v63 = vpack.c.bf16 %v883_v58, %v882_v57  ;;  %v757_v55 = vmul.f32 %v1445_v52, %v1888_v42  ;;  %v758_v58 = vmul.f32 %v1446_v53, %v1888_v42 }
  0xaf   :  { %v509_v1 = vpop.f32.mrf.mxu1 }
  0xb0   :  { %1002 = vmatmul.bf16.vlgmr.msra.gmra.mxu2 %v914_v63  ;;  %v510_v4 = vadd.f32 %v509_v1, %v420_v62 }
  0xb1   :  { %459 = vmatmul.bf16.gmra.mxu0 %v1226_v61 }
  0xb2   :  { %548 = vmatmul.bf16.gmra.mxu1 %v1230_v0  ;;  %v785_v10 = vadd.f32 %v753_v5, %v510_v4 }
  0xb4   :  { %v1912_v6 = vpop.f32.mrf.mxu3  ;;  %v884_v17 = vmax.f32 %v785_v10, 0.0  ;;  %v1450_v10 = vunpack.c.h.bf16 %v1578_v3 }
  0xb6   :  { %v422_v7 = vpop.f32.mrf.mxu0  ;;  %v760_v16 = vmul.f32 %v1450_v10, %v1888_v42  ;;  %v1588_v10 = vld [vmem:[%s2075_s2 + $0x70] sm:$0xff]  }
  0xb7   :  { %v511_v9 = vpop.f32.mrf.mxu1 }
  0xb8   :  { %v512_v11 = vadd.f32 %v511_v9, %v422_v7  ;;  %v1586_v9 = vld [vmem:[%s2075_s2 + $0x60] sm:$0xff]  }
  0xb9   :  { %v1481_v14 = vunpack.c.l.bf16 %v1586_v9 }
  0xba   :  { %v786_v12 = vadd.f32 %v754_v8, %v512_v11  ;;  %v1449_v8 = vunpack.c.l.bf16 %v1578_v3 }
  0xbc   :  { %v885_v18 = vmax.f32 %v786_v12, 0.0  ;;  %v1927_v19 = vpop.f32.mrf.mxu3  ;;  %v759_v12 = vmul.f32 %v1449_v8, %v1888_v42 }
  0xbe   :  { %v425_v22 = vpop.f32.mrf.mxu0  ;;  %v915_v23 = vpack.c.bf16 %v885_v18, %v884_v17  ;;  %v1482_v18 = vunpack.c.h.bf16 %v1586_v9 }
  0xbf   :  { %v514_v25 = vpop.f32.mrf.mxu1 }
  0xc0   :  { %1007 = vmatmul.bf16.gmra.mxu2 %v915_v23  ;;  %v515_v28 = vadd.f32 %v514_v25, %v425_v22  ;;  %v775_v23 = vmul.f32 %v1481_v14, %v1888_v42  ;;  %v776_v25 = vmul.f32 %v1482_v18, %v1888_v42 }
  0xc1   :  { %464 = vmatmul.bf16.gmra.mxu0 %v1234_v21 }
  0xc2   :  { %553 = vmatmul.bf16.gmra.mxu1 %v1238_v24  ;;  %v787_v34 = vadd.f32 %v755_v29, %v515_v28 }
  0xc4   :  { %v1933_v30 = vpop.f32.mrf.mxu3  ;;  %v886_v41 = vmax.f32 %v787_v34, 0.0 }
  0xc6   :  { %v427_v31 = vpop.f32.mrf.mxu0 }
  0xc7   :  { %v516_v33 = vpop.f32.mrf.mxu1 }
  0xc8   :  { %v517_v35 = vadd.f32 %v516_v33, %v427_v31 }
  0xca   :  { %v788_v36 = vadd.f32 %v756_v32, %v517_v35  ;;  %v1579_v32 = vld [vmem:[%s2075_s2 + $0x28] sm:$0xff]  }
  0xcb   :  { %v1454_v40 = vunpack.c.h.bf16 %v1579_v32 }
  0xcc   :  { %v887_v43 = vmax.f32 %v788_v36, 0.0  ;;  %v1948_v44 = vpop.f32.mrf.mxu3 }
  0xce   :  { %v430_v48 = vpop.f32.mrf.mxu0  ;;  %v916_v49 = vpack.c.bf16 %v887_v43, %v886_v41 }
  0xcf   :  { %v519_v51 = vpop.f32.mrf.mxu1 }
  0xd0   :  { %1012 = vmatmul.bf16.gmra.mxu2 %v916_v49  ;;  %v520_v54 = vadd.f32 %v519_v51, %v430_v48  ;;  %v762_v49 = vmul.f32 %v1454_v40, %v1888_v42  ;;  %v1486_v51 = vunpack.c.h.bf16 %v1587_v39 }
  0xd1   :  { %469 = vmatmul.bf16.gmra.mxu0 %v1242_v47  ;;  %v1485_v47 = vunpack.c.l.bf16 %v1587_v39  ;;  %v1589_v39 = vld [vmem:[%s2075_s2 + $0x78] sm:$0xff]  }
  0xd2   :  { %558 = vmatmul.bf16.gmra.mxu1 %v1246_v50  ;;  %v789_v61 = vadd.f32 %v757_v55, %v520_v54 }
  0xd3   :  { %v777_v55 = vmul.f32 %v1485_v47, %v1888_v42 }
  0xd4   :  { %v1954_v56 = vpop.f32.mrf.mxu3  ;;  %v888_v0 = vmax.f32 %v789_v61, 0.0 }
  0xd6   :  { %v432_v57 = vpop.f32.mrf.mxu0 }
  0xd7   :  { %v521_v60 = vpop.f32.mrf.mxu1 }
  0xd8   :  { %v522_v62 = vadd.f32 %v521_v60, %v432_v57 }
  0xda   :  { %v790_v63 = vadd.f32 %v758_v58, %v522_v62  ;;  %v778_v58 = vmul.f32 %v1486_v51, %v1888_v42 }
  0xdc   :  { %v889_v1 = vmax.f32 %v790_v63, 0.0  ;;  %v1957_v2 = vpop.f32.mrf.mxu3 }
  0xde   :  { %v435_v4 = vpop.f32.mrf.mxu0  ;;  %v917_v5 = vpack.c.bf16 %v889_v1, %v888_v0  ;;  %v1580_v1 = vld [vmem:[%s2075_s2 + $0x30] sm:$0xff]  }
  0xdf   :  { %v524_v7 = vpop.f32.mrf.mxu1 }
  0xe0   :  { %1017 = vmatmul.bf16.gmra.mxu2 %v917_v5  ;;  %v525_v11 = vadd.f32 %v524_v7, %v435_v4 }
  0xe2   :  { %v791_v20 = vadd.f32 %v759_v12, %v525_v11  ;;  %v1458_v11 = vunpack.c.h.bf16 %v1580_v1 }
  0xe4   :  { %v564_v13 = vpop.f32.mrf.mxu3  ;;  %v890_v26 = vmax.f32 %v791_v20, 0.0  ;;  %v1490_v20 = vunpack.c.h.bf16 %v1588_v10 }
  0xe5   :  { %v565_v22 = vadd.f32 %v564_v13, %v1891_v46  ;;  %v1453_v46 = vunpack.c.l.bf16 %v1579_v32 }
  0xe6   :  { %v437_v15 = vpop.f32.mrf.mxu0 }
  0xe7   :  { %v526_v17 = vpop.f32.mrf.mxu1  ;;  %v807_v29 = vadd.f32 %v775_v23, %v565_v22 }
  0xe8   :  { %v527_v21 = vadd.f32 %v526_v17, %v437_v15  ;;  %v1489_v15 = vunpack.c.l.bf16 %v1588_v10  ;;  %v764_v17 = vmul.f32 %v1458_v11, %v1888_v42 }
  0xe9   :  { %v906_v37 = vmax.f32 %v807_v29, 0.0 }
  0xea   :  { %v792_v24 = vadd.f32 %v760_v16, %v527_v21 }
  0xec   :  { %v891_v27 = vmax.f32 %v792_v24, 0.0  ;;  %v566_v28 = vpop.f32.mrf.mxu3  ;;  %v779_v24 = vmul.f32 %v1489_v15, %v1888_v42 }
  0xed   :  { %v567_v31 = vadd.f32 %v566_v28, %v1906_v59  ;;  %v761_v59 = vmul.f32 %v1453_v46, %v1888_v42 }
  0xee   :  { %v440_v33 = vpop.f32.mrf.mxu0  ;;  %v918_v34 = vpack.c.bf16 %v891_v27, %v890_v26  ;;  %v780_v26 = vmul.f32 %v1490_v20, %v1888_v42 }
  0xef   :  { %v808_v35 = vadd.f32 %v776_v25, %v567_v31  ;;  %v529_v36 = vpop.f32.mrf.mxu1 }
  0xf0   :  { %1022 = vmatmul.bf16.gmra.mxu2 %v918_v34  ;;  %v530_v43 = vadd.f32 %v529_v36, %v440_v33  ;;  %v1581_v33 = vld [vmem:[%s2075_s2 + $0x38] sm:$0xff]  }
  0xf1   :  { %v907_v38 = vmax.f32 %v808_v35, 0.0  ;;  %v1462_v40 = vunpack.c.h.bf16 %v1581_v33 }
  0xf2   :  { %v793_v52 = vadd.f32 %v761_v59, %v530_v43 }
  0xf3   :  { %v926_v41 = vpack.c.bf16 %v907_v38, %v906_v37 }
  0xf4   :  { %v569_v45 = vpop.f32.mrf.mxu3  ;;  %v892_v60 = vmax.f32 %v793_v52, 0.0 }
  0xf5   :  { %1062 = vmatmul.bf16.vlgmr.msra.gmra.mxu3 %v926_v41  ;;  %v570_v54 = vadd.f32 %v569_v45, %v1912_v6  ;;  %v1457_v6 = vunpack.c.l.bf16 %v1580_v1  ;;  %v1493_v45 = vunpack.c.l.bf16 %v1589_v39 }
  0xf6   :  { %v442_v48 = vpop.f32.mrf.mxu0 }
  0xf7   :  { %v531_v50 = vpop.f32.mrf.mxu1  ;;  %v809_v63 = vadd.f32 %v777_v55, %v570_v54  ;;  %v781_v54 = vmul.f32 %v1493_v45, %v1888_v42 }
  0xf8   :  { %v532_v53 = vadd.f32 %v531_v50, %v442_v48  ;;  %v766_v48 = vmul.f32 %v1462_v40, %v1888_v42  ;;  %v1494_v50 = vunpack.c.h.bf16 %v1589_v39 }
  0xf9   :  { %v908_v8 = vmax.f32 %v809_v63, 0.0 }
  0xfa   :  { %v794_v57 = vadd.f32 %v762_v49, %v532_v53 }
  0xfc   :  { %v893_v61 = vmax.f32 %v794_v57, 0.0  ;;  %v571_v62 = vpop.f32.mrf.mxu3  ;;  %v782_v57 = vmul.f32 %v1494_v50, %v1888_v42 }
  0xfd   :  { %v572_v0 = vadd.f32 %v571_v62, %v1927_v19  ;;  %v763_v19 = vmul.f32 %v1457_v6, %v1888_v42 }
  0xfe   :  { %v445_v3 = vpop.f32.mrf.mxu0  ;;  %v919_v4 = vpack.c.bf16 %v893_v61, %v892_v60 }
  0xff   :  { %v810_v5 = vadd.f32 %v778_v58, %v572_v0  ;;  %v534_v7 = vpop.f32.mrf.mxu1  ;;  %v1582_v0 = vld [vmem:[%s2075_s2 + $0x40] sm:$0xff]  }
 0x100   :  { %1027 = vmatmul.bf16.gmra.mxu2 %v919_v4  ;;  %v535_v13 = vadd.f32 %v534_v7, %v445_v3 }
 0x101   :  { %v909_v9 = vmax.f32 %v810_v5, 0.0 }
 0x102   :  { %v795_v21 = vadd.f32 %v763_v19, %v535_v13 }
 0x103   :  { %v927_v12 = vpack.c.bf16 %v909_v9, %v908_v8  ;;  %v1466_v8 = vunpack.c.h.bf16 %v1582_v0 }
 0x104   :  { %v574_v14 = vpop.f32.mrf.mxu3  ;;  %v894_v27 = vmax.f32 %v795_v21, 0.0 }
 0x105   :  { %1067 = vmatmul.bf16.gmra.mxu3 %v927_v12  ;;  %v575_v23 = vadd.f32 %v574_v14, %v1933_v30  ;;  %v1461_v30 = vunpack.c.l.bf16 %v1581_v33 }
 0x106   :  { %v447_v16 = vpop.f32.mrf.mxu0 }
 0x107   :  { %v536_v18 = vpop.f32.mrf.mxu1  ;;  %v811_v31 = vadd.f32 %v779_v24, %v575_v23 }
 0x108   :  { %v537_v22 = vadd.f32 %v536_v18, %v447_v16  ;;  %v1583_v18 = vld [vmem:[%s2075_s2 + $0x48] sm:$0xff]  }
 0x109   :  { %v910_v37 = vmax.f32 %v811_v31, 0.0  ;;  %v1469_v23 = vunpack.c.l.bf16 %v1583_v18  ;;  %v1470_v24 = vunpack.c.h.bf16 %v1583_v18 }
 0x10a   :  { %v796_v25 = vadd.f32 %v764_v17, %v537_v22 }
 0x10c   :  { %v895_v28 = vmax.f32 %v796_v25, 0.0  ;;  %v576_v29 = vpop.f32.mrf.mxu3 }
 0x10d   :  { %v577_v32 = vadd.f32 %v576_v29, %v1948_v44  ;;  %v765_v44 = vmul.f32 %v1461_v30, %v1888_v42  ;;  %v770_v29 = vmul.f32 %v1470_v24, %v1888_v42 }
 0x10e   :  { %v450_v34 = vpop.f32.mrf.mxu0  ;;  %v920_v35 = vpack.c.bf16 %v895_v28, %v894_v27  ;;  %v769_v27 = vmul.f32 %v1469_v23, %v1888_v42 }
 0x10f   :  { %v812_v36 = vadd.f32 %v780_v26, %v577_v32  ;;  %v539_v46 = vpop.f32.mrf.mxu1 }
 0x110   :  { %1032 = vmatmul.bf16.gmra.mxu2 %v920_v35  ;;  %v540_v43 = vadd.f32 %v539_v46, %v450_v34 }
 0x111   :  { %v911_v38 = vmax.f32 %v812_v36, 0.0 }
 0x112   :  { %v797_v51 = vadd.f32 %v765_v44, %v540_v43 }
 0x113   :  { %v928_v41 = vpack.c.bf16 %v911_v38, %v910_v37  ;;  %v1584_v37 = vld [vmem:[%s2075_s2 + $0x50] sm:$0xff]  }
 0x114   :  { %v579_v59 = vpop.f32.mrf.mxu3  ;;  %v896_v58 = vmax.f32 %v797_v51, 0.0  ;;  %v1474_v43 = vunpack.c.h.bf16 %v1584_v37 }
 0x115   :  { %1072 = vmatmul.bf16.gmra.mxu3 %v928_v41  ;;  %v580_v53 = vadd.f32 %v579_v59, %v1954_v56  ;;  %v1465_v56 = vunpack.c.l.bf16 %v1582_v0  ;;  %v1473_v41 = vunpack.c.l.bf16 %v1584_v37 }
 0x116   :  { %v452_v47 = vpop.f32.mrf.mxu0 }
 0x117   :  { %v541_v49 = vpop.f32.mrf.mxu1  ;;  %v813_v62 = vadd.f32 %v781_v54, %v580_v53  ;;  %v767_v11 = vmul.f32 %v1465_v56, %v1888_v42  ;;  %v771_v45 = vmul.f32 %v1473_v41, %v1888_v42 }
 0x118   :  { %v542_v52 = vadd.f32 %v541_v49, %v452_v47 }
 0x119   :  { %v912_v7 = vmax.f32 %v813_v62, 0.0 }
 0x11a   :  { %v798_v55 = vadd.f32 %v766_v48, %v542_v52  ;;  %v772_v48 = vmul.f32 %v1474_v43, %v1888_v42 }
 0x11c   :  { %v897_v60 = vmax.f32 %v798_v55, 0.0  ;;  %v581_v61 = vpop.f32.mrf.mxu3 }
 0x11d   :  { %v582_v63 = vadd.f32 %v581_v61, %v1957_v2  ;;  %v768_v2 = vmul.f32 %v1466_v8, %v1888_v42 }
 0x11e   :  { %v455_v1 = vpop.f32.mrf.mxu0  ;;  %v921_v3 = vpack.c.bf16 %v897_v60, %v896_v58  ;;  %v1585_v58 = vld [vmem:[%s2075_s2 + $0x58] sm:$0xff]  }
 0x11f   :  { %v814_v4 = vadd.f32 %v782_v57, %v582_v63  ;;  %v544_v5 = vpop.f32.mrf.mxu1  ;;  %v1477_v63 = vunpack.c.l.bf16 %v1585_v58  ;;  %v1478_v0 = vunpack.c.h.bf16 %v1585_v58 }
 0x120   :  { %1037 = vmatmul.bf16.gmra.mxu2 %v921_v3  ;;  %v545_v10 = vadd.f32 %v544_v5, %v455_v1 }
 0x121   :  { %v913_v6 = vmax.f32 %v814_v4, 0.0  ;;  %v773_v4 = vmul.f32 %v1477_v63, %v1888_v42  ;;  %v774_v56 = vmul.f32 %v1478_v0, %v1888_v42 }
 0x122   :  { %v799_v19 = vadd.f32 %v767_v11, %v545_v10 }
 0x123   :  { %v929_v9 = vpack.c.bf16 %v913_v6, %v912_v7 }
 0x124   :  { %v898_v16 = vmax.f32 %v799_v19, 0.0 }
 0x125   :  { %1077 = vmatmul.bf16.gmra.mxu3 %v929_v9 }
 0x126   :  { %v457_v12 = vpop.f32.mrf.mxu0 }
 0x127   :  { %v546_v13 = vpop.f32.mrf.mxu1 }
 0x128   :  { %v547_v14 = vadd.f32 %v546_v13, %v457_v12 }
 0x12a   :  { %v800_v15 = vadd.f32 %v768_v2, %v547_v14 }
 0x12c   :  { %v899_v17 = vmax.f32 %v800_v15, 0.0 }
 0x12e   :  { %v460_v20 = vpop.f32.mrf.mxu0  ;;  %v922_v21 = vpack.c.bf16 %v899_v17, %v898_v16 }
 0x12f   :  { %v549_v22 = vpop.f32.mrf.mxu1 }
 0x130   :  { %1042 = vmatmul.bf16.gmra.mxu2 %v922_v21  ;;  %v550_v26 = vadd.f32 %v549_v22, %v460_v20 }
 0x132   :  { %v801_v32 = vadd.f32 %v769_v27, %v550_v26 }
 0x133   :  { %v1003_v25 = vpop.f32.mrf.mxu2 }
 0x134   :  { %v900_v36 = vmax.f32 %v801_v32, 0.0 }
 0x136   :  { %v462_v28 = vpop.f32.mrf.mxu0 }
 0x137   :  { %v551_v31 = vpop.f32.mrf.mxu1 }
 0x138   :  { %v552_v33 = vadd.f32 %v551_v31, %v462_v28 }
 0x13a   :  { %v802_v34 = vadd.f32 %v770_v29, %v552_v33 }
 0x13b   :  { %v1005_v35 = vpop.f32.mrf.mxu2 }
 0x13c   :  { %v901_v46 = vmax.f32 %v802_v34, 0.0  ;;  %v1498_v30 = vpack.c.bf16 %v1005_v35, %v1003_v25 }
 0x13e   :  { %1499 = vst [vmem:[%s2079_s4] sm:$0xff] %v1498_v30   ;;  %v465_v38 = vpop.f32.mrf.mxu0  ;;  %v923_v39 = vpack.c.bf16 %v901_v46, %v900_v36 }
 0x13f   :  { %v554_v40 = vpop.f32.mrf.mxu1 }
 0x140   :  { %1047 = vmatmul.bf16.gmra.mxu2 %v923_v39  ;;  %v555_v59 = vadd.f32 %v554_v40, %v465_v38 }
 0x142   :  { %v803_v50 = vadd.f32 %v771_v45, %v555_v59 }
 0x143   :  { %v1008_v44 = vpop.f32.mrf.mxu2 }
 0x144   :  { %v902_v54 = vmax.f32 %v803_v50, 0.0 }
 0x146   :  { %v467_v47 = vpop.f32.mrf.mxu0 }
 0x147   :  { %v556_v49 = vpop.f32.mrf.mxu1 }
 0x148   :  { %v557_v51 = vadd.f32 %v556_v49, %v467_v47 }
 0x14a   :  { %v804_v52 = vadd.f32 %v772_v48, %v557_v51 }
 0x14b   :  { %v1010_v53 = vpop.f32.mrf.mxu2 }
 0x14c   :  { %v903_v55 = vmax.f32 %v804_v52, 0.0  ;;  %v1503_v57 = vpack.c.bf16 %v1010_v53, %v1008_v44 }
 0x14e   :  { %1590 = vst [vmem:[%s2079_s4 + $0x8] sm:$0xff] %v1503_v57   ;;  %v470_v60 = vpop.f32.mrf.mxu0  ;;  %v924_v61 = vpack.c.bf16 %v903_v55, %v902_v54 }
 0x14f   :  { %v559_v62 = vpop.f32.mrf.mxu1 }
 0x150   :  { %1052 = vmatmul.bf16.gmra.mxu2 %v924_v61  ;;  %v560_v3 = vadd.f32 %v559_v62, %v470_v60 }
 0x152   :  { %v805_v6 = vadd.f32 %v773_v4, %v560_v3 }
 0x153   :  { %v1013_v1 = vpop.f32.mrf.mxu2 }
 0x154   :  { %v904_v11 = vmax.f32 %v805_v6, 0.0 }
 0x156   :  { %v472_v5 = vpop.f32.mrf.mxu0 }
 0x157   :  { %v561_v7 = vpop.f32.mrf.mxu1 }
 0x158   :  { %v562_v8 = vadd.f32 %v561_v7, %v472_v5 }
 0x15a   :  { %v806_v9 = vadd.f32 %v774_v56, %v562_v8 }
 0x15b   :  { %v1015_v10 = vpop.f32.mrf.mxu2 }
 0x15c   :  { %v905_v12 = vmax.f32 %v806_v9, 0.0  ;;  %v1508_v2 = vpack.c.bf16 %v1015_v10, %v1013_v1 }
 0x15e   :  { %1591 = vst [vmem:[%s2079_s4 + $0x10] sm:$0xff] %v1508_v2   ;;  %v925_v13 = vpack.c.bf16 %v905_v12, %v904_v11 }
 0x160   :  { %1057 = vmatmul.bf16.gmra.mxu2 %v925_v13 }
 0x163   :  { %v1018_v19 = vpop.f32.mrf.mxu2 }
 0x16b   :  { %v1020_v14 = vpop.f32.mrf.mxu2 }
 0x16c   :  { %v1513_v15 = vpack.c.bf16 %v1020_v14, %v1018_v19 }
 0x16e   :  { %1592 = vst [vmem:[%s2079_s4 + $0x18] sm:$0xff] %v1513_v15  }
 0x173   :  { %v1023_v42 = vpop.f32.mrf.mxu2 }
 0x178   :  { %v1063_v16 = vpop.f32.mrf.mxu3 }
 0x17b   :  { %v1025_v17 = vpop.f32.mrf.mxu2 }
 0x17c   :  { %v1518_v18 = vpack.c.bf16 %v1025_v17, %v1023_v42 }
 0x17e   :  { %1593 = vst [vmem:[%s2079_s4 + $0x20] sm:$0xff] %v1518_v18  }
 0x180   :  { %v1065_v20 = vpop.f32.mrf.mxu3 }
 0x181   :  { %v1558_v21 = vpack.c.bf16 %v1065_v20, %v1063_v16 }
 0x183   :  { %1601 = vst [vmem:[%s2079_s4 + $0x60] sm:$0xff] %v1558_v21   ;;  %v1028_v22 = vpop.f32.mrf.mxu2 }
 0x188   :  { %v1068_v23 = vpop.f32.mrf.mxu3 }
 0x18b   :  { %v1030_v24 = vpop.f32.mrf.mxu2 }
 0x18c   :  { %v1523_v25 = vpack.c.bf16 %v1030_v24, %v1028_v22 }
 0x18e   :  { %1594 = vst [vmem:[%s2079_s4 + $0x28] sm:$0xff] %v1523_v25  }
 0x190   :  { %v1070_v26 = vpop.f32.mrf.mxu3 }
 0x191   :  { %v1563_v27 = vpack.c.bf16 %v1070_v26, %v1068_v23 }
 0x193   :  { %1602 = vst [vmem:[%s2079_s4 + $0x68] sm:$0xff] %v1563_v27   ;;  %v1033_v28 = vpop.f32.mrf.mxu2 }
 0x198   :  { %v1073_v29 = vpop.f32.mrf.mxu3 }
 0x19b   :  { %v1035_v31 = vpop.f32.mrf.mxu2 }
 0x19c   :  { %v1528_v32 = vpack.c.bf16 %v1035_v31, %v1033_v28 }
 0x19e   :  { %1595 = vst [vmem:[%s2079_s4 + $0x30] sm:$0xff] %v1528_v32  }
 0x1a0   :  { %v1075_v33 = vpop.f32.mrf.mxu3 }
 0x1a1   :  { %v1568_v34 = vpack.c.bf16 %v1075_v33, %v1073_v29 }
 0x1a3   :  { %1603 = vst [vmem:[%s2079_s4 + $0x70] sm:$0xff] %v1568_v34   ;;  %v1038_v35 = vpop.f32.mrf.mxu2 }
 0x1a8   :  { %v1078_v36 = vpop.f32.mrf.mxu3 }
 0x1ab   :  { %v1040_v46 = vpop.f32.mrf.mxu2 }
 0x1ac   :  { %v1533_v30 = vpack.c.bf16 %v1040_v46, %v1038_v35 }
 0x1ae   :  { %1596 = vst [vmem:[%s2079_s4 + $0x38] sm:$0xff] %v1533_v30  }
 0x1b0   :  { %v1080_v37 = vpop.f32.mrf.mxu3 }
 0x1b1   :  { %v1573_v38 = vpack.c.bf16 %v1080_v37, %v1078_v36 }
 0x1b3   :  { %1604 = vst [vmem:[%s2079_s4 + $0x78] sm:$0xff] %v1573_v38   ;;  %v1043_v39 = vpop.f32.mrf.mxu2 }
 0x1bb   :  { %v1045_v40 = vpop.f32.mrf.mxu2 }
 0x1bc   :  { %v1538_v41 = vpack.c.bf16 %v1045_v40, %v1043_v39 }
 0x1be   :  { %1597 = vst [vmem:[%s2079_s4 + $0x40] sm:$0xff] %v1538_v41  }
 0x1c3   :  { %v1048_v43 = vpop.f32.mrf.mxu2 }
 0x1cb   :  { %v1050_v44 = vpop.f32.mrf.mxu2 }
 0x1cc   :  { %v1543_v59 = vpack.c.bf16 %v1050_v44, %v1048_v43 }
 0x1ce   :  { %1598 = vst [vmem:[%s2079_s4 + $0x48] sm:$0xff] %v1543_v59  }
 0x1d3   :  { %v1053_v45 = vpop.f32.mrf.mxu2 }
 0x1db   :  { %v1055_v47 = vpop.f32.mrf.mxu2 }
 0x1dc   :  { %v1548_v48 = vpack.c.bf16 %v1055_v47, %v1053_v45 }
 0x1de   :  { %1599 = vst [vmem:[%s2079_s4 + $0x50] sm:$0xff] %v1548_v48  }
 0x1e3   :  { %v1058_v49 = vpop.f32.mrf.mxu2 }
 0x1eb   :  { %v1060_v50 = vpop.f32.mrf.mxu2 }
 0x1ec   :  { %v1553_v51 = vpack.c.bf16 %v1060_v50, %v1058_v49 }
 0x1ee   :  { %1600 = vst [vmem:[%s2079_s4 + $0x58] sm:$0xff] %v1553_v51  }

// kernel: gnn_forward.3
= control target key start
LH: loop header
LB: loop body
LE: loop exit
PB: predicated region body
PF: predicated region fallthrough
CT: control target
= control target key end

     0   :  { %s2809_s2 = inlined_call_operand.vmem [shape: bf16[256,128], index: 2, kind: input, shape index: {}]   ;;  %s2810_s1 = inlined_call_operand.vmem [shape: bf16[256,256], index: 1, kind: input, shape index: {}]   ;;  %s2811_s3 = inlined_call_operand.vmem [shape: bf16[128,128], index: 3, kind: input, shape index: {}]   ;;  %s2812_s0 = inlined_call_operand.<no memory space> [shape: f32[1], index: 0, kind: input, shape index: {}]   ;;  %s2813_s4 = inlined_call_operand.vmem [shape: f32[1,128], index: 4, kind: input, shape index: {}]   ;;  %s2814_s5 = inlined_call_operand.vmem [shape: f32[1,128], index: 5, kind: input, shape index: {}]   ;;  %s2815_s6 = inlined_call_operand.vmem [shape: f32[256,128], index: 6, kind: output, shape index: {}]  }
   0x1   :  { %v1716_v0 = vld [vmem:[%s2809_s2 + $0x38] sm:$0xff]  ;;  %v1715_v2 = vld [vmem:[%s2809_s2 + $0x30] sm:$0xff]  ;;  %v1714_v4 = vld [vmem:[%s2809_s2 + $0x28] sm:$0xff]  ;;  %s691_s30 = sadd.f32 1.0, %s2812_s0 }
   0x2   :  { %v1724_v1 = vld [vmem:[%s2809_s2 + $0x78] sm:$0xff]  ;;  %412 = vmatpush.bf16.msra.mxu0 %v1716_v0  ;;  %1812 = vmatpush.bf16.msra.mxu3 %v1716_v0  ;;  %v1723_v3 = vld [vmem:[%s2809_s2 + $0x70] sm:$0xff]  ;;  %v1722_v5 = vld [vmem:[%s2809_s2 + $0x68] sm:$0xff] }
   0x3   :  { %501 = vmatpush.bf16.msra.mxu1 %v1724_v1  ;;  %v1713_v6 = vld [vmem:[%s2809_s2 + $0x20] sm:$0xff]  ;;  %v1712_v8 = vld [vmem:[%s2809_s2 + $0x18] sm:$0xff]  ;;  %v1711_v10 = vld [vmem:[%s2809_s2 + $0x10] sm:$0xff] }
   0x4   :  { %v1721_v7 = vld [vmem:[%s2809_s2 + $0x60] sm:$0xff]  ;;  %v1720_v9 = vld [vmem:[%s2809_s2 + $0x58] sm:$0xff]  ;;  %v1719_v11 = vld [vmem:[%s2809_s2 + $0x50] sm:$0xff] }
   0x5   :  { %v1710_v12 = vld [vmem:[%s2809_s2 + $0x8] sm:$0xff]  ;;  %v1709_v14 = vld [vmem:[%s2809_s2] sm:$0xff]  ;;  %v1463_v25 = vld [vmem:[%s2810_s1 + $0x10] sm:$0xf] }
   0x6   :  { %413 = vmatpush.bf16.msra.mxu0 %v1715_v2  ;;  %1813 = vmatpush.bf16.msra.mxu3 %v1715_v2  ;;  %v1718_v13 = vld [vmem:[%s2809_s2 + $0x48] sm:$0xff]  ;;  %v1455_v15 = vld [vmem:[%s2810_s1] sm:$0xf]  ;;  %v1677_v20 = vld [vmem:[%s2810_s1 + $0x4] sm:$0xf] }
   0x7   :  { %502 = vmatpush.bf16.msra.mxu1 %v1723_v3  ;;  %v1678_v16 = vld [vmem:[%s2810_s1 + $0x4] sm:$0xf0]  ;;  %v1551_v17 = vld [vmem:[%s2810_s1 + $0xc0] sm:$0xf]  ;;  %v1457_v21 = vld [vmem:[%s2810_s1 + $0x8] sm:$0xf0] }
   0x8   :  { %v1702_v18 = vld [vmem:[%s2810_s1 + $0xc4] sm:$0xf0]  ;;  %v1717_v19 = vld [vmem:[%s2809_s2 + $0x40] sm:$0xff]  ;;  %v1456_v22 = vor.u32 %v1678_v16, %v1455_v15  ;;  %v1460_v24 = vor.u32 %v1677_v20, %v1457_v21  ;;  %v1680_v26 = vld [vmem:[%s2810_s1 + $0x14] sm:$0xf0] }
   0x9   :  { %v1552_v23 = vor.u32 %v1702_v18, %v1551_v17  ;;  %v1559_v27 = vld [vmem:[%s2810_s1 + $0xd0] sm:$0xf]  ;;  %v1704_v28 = vld [vmem:[%s2810_s1 + $0xd4] sm:$0xf0]  ;;  %v1679_v29 = vld [vmem:[%s2810_s1 + $0x14] sm:$0xf]  ;;  %v1464_v31 = vor.u32 %v1680_v26, %v1463_v25 }
   0xa   :  { %414 = vmatpush.bf16.msra.mxu0 %v1714_v4  ;;  %1814 = vmatpush.bf16.msra.mxu3 %v1714_v4  ;;  %v1465_v30 = vld [vmem:[%s2810_s1 + $0x18] sm:$0xf0]  ;;  %v1560_v32 = vor.u32 %v1704_v28, %v1559_v27  ;;  %v1471_v34 = vld [vmem:[%s2810_s1 + $0x20] sm:$0xf]  ;;  %v1682_v35 = vld [vmem:[%s2810_s1 + $0x24] sm:$0xf0] }
   0xb   :  { %503 = vmatpush.bf16.msra.mxu1 %v1722_v5  ;;  %v1468_v33 = vor.u32 %v1679_v29, %v1465_v30  ;;  %v1567_v36 = vld [vmem:[%s2810_s1 + $0xe0] sm:$0xf]  ;;  %v1706_v37 = vld [vmem:[%s2810_s1 + $0xe4] sm:$0xf0]  ;;  %v1681_v38 = vld [vmem:[%s2810_s1 + $0x24] sm:$0xf]  ;;  %v1472_v40 = vor.u32 %v1682_v35, %v1471_v34 }
   0xc   :  { %v1473_v39 = vld [vmem:[%s2810_s1 + $0x28] sm:$0xf0]  ;;  %v1568_v41 = vor.u32 %v1706_v37, %v1567_v36  ;;  %v1479_v43 = vld [vmem:[%s2810_s1 + $0x30] sm:$0xf]  ;;  %v1684_v44 = vld [vmem:[%s2810_s1 + $0x34] sm:$0xf0] }
   0xd   :  { %v1476_v42 = vor.u32 %v1681_v38, %v1473_v39  ;;  %v1575_v45 = vld [vmem:[%s2810_s1 + $0xf0] sm:$0xf]  ;;  %v1708_v46 = vld [vmem:[%s2810_s1 + $0xf4] sm:$0xf0]  ;;  %v1683_v47 = vld [vmem:[%s2810_s1 + $0x34] sm:$0xf]  ;;  %v1480_v49 = vor.u32 %v1684_v44, %v1479_v43  ;;  %v2235_v43 = vstv %s691_s30 }
   0xe   :  { %415 = vmatpush.bf16.msra.mxu0 %v1713_v6  ;;  %1815 = vmatpush.bf16.msra.mxu3 %v1713_v6  ;;  %v1481_v48 = vld [vmem:[%s2810_s1 + $0x38] sm:$0xf0]  ;;  %v1576_v50 = vor.u32 %v1708_v46, %v1575_v45  ;;  %v1487_v52 = vld [vmem:[%s2810_s1 + $0x40] sm:$0xf]  ;;  %v1686_v53 = vld [vmem:[%s2810_s1 + $0x44] sm:$0xf0] }
   0xf   :  { %504 = vmatpush.bf16.msra.mxu1 %v1721_v7  ;;  %v1484_v51 = vor.u32 %v1683_v47, %v1481_v48  ;;  %v1701_v54 = vld [vmem:[%s2810_s1 + $0xc4] sm:$0xf]  ;;  %v1553_v55 = vld [vmem:[%s2810_s1 + $0xc8] sm:$0xf0]  ;;  %v1488_v58 = vor.u32 %v1686_v53, %v1487_v52  ;;  %v1732_v61 = vld [vmem:[%s2811_s3 + $0x38] sm:$0xff] }
  0x10   :  { %v1685_v56 = vld [vmem:[%s2810_s1 + $0x44] sm:$0xf]  ;;  %v1489_v57 = vld [vmem:[%s2810_s1 + $0x48] sm:$0xf0]  ;;  %v1556_v59 = vor.u32 %v1701_v54, %v1553_v55  ;;  %972 = vmatpush.bf16.msra.mxu2 %v1732_v61  ;;  %v1495_v62 = vld [vmem:[%s2810_s1 + $0x50] sm:$0xf] }
  0x11   :  { %v1492_v60 = vor.u32 %v1685_v56, %v1489_v57  ;;  %v1688_v63 = vld [vmem:[%s2810_s1 + $0x54] sm:$0xf0]  ;;  %v1703_v0 = vld [vmem:[%s2810_s1 + $0xd4] sm:$0xf]  ;;  %v1505_v15 = vld [vmem:[%s2810_s1 + $0x68] sm:$0xf0] }
  0x12   :  { %416 = vmatpush.bf16.msra.mxu0 %v1712_v8  ;;  %1816 = vmatpush.bf16.msra.mxu3 %v1712_v8  ;;  %v1687_v2 = vld [vmem:[%s2810_s1 + $0x54] sm:$0xf]  ;;  %v1496_v4 = vor.u32 %v1688_v63, %v1495_v62  ;;  %v1730_v8 = vld [vmem:[%s2811_s3 + $0x28] sm:$0xff]  ;;  %v1728_v18 = vld [vmem:[%s2811_s3 + $0x18] sm:$0xff] }
  0x13   :  { %505 = vmatpush.bf16.msra.mxu1 %v1720_v9  ;;  %v1727_v20 = vld [vmem:[%s2811_s3 + $0x10] sm:$0xff]  ;;  %v1726_v21 = vld [vmem:[%s2811_s3 + $0x8] sm:$0xff]  ;;  %v1577_v26 = vld [vmem:[%s2810_s1 + $0xf8] sm:$0xf0] }
  0x14   :  { %v1707_v25 = vld [vmem:[%s2810_s1 + $0xf4] sm:$0xf]  ;;  %v1513_v28 = vld [vmem:[%s2810_s1 + $0x78] sm:$0xf0]  ;;  %v1693_v34 = vld [vmem:[%s2810_s1 + $0x84] sm:$0xf] }
  0x15   :  { %v1691_v27 = vld [vmem:[%s2810_s1 + $0x74] sm:$0xf]  ;;  %v1580_v30 = vor.u32 %v1707_v25, %v1577_v26  ;;  %v1521_v35 = vld [vmem:[%s2810_s1 + $0x88] sm:$0xf0]  ;;  %v1527_v53 = vld [vmem:[%s2810_s1 + $0x90] sm:$0xf] }
  0x16   :  { %417 = vmatpush.bf16.msra.mxu0 %v1711_v10  ;;  %1817 = vmatpush.bf16.msra.mxu3 %v1711_v10  ;;  %v1503_v10 = vld [vmem:[%s2810_s1 + $0x60] sm:$0xf]  ;;  %v1524_v38 = vor.u32 %v1693_v34, %v1521_v35  ;;  %v1696_v54 = vld [vmem:[%s2810_s1 + $0x94] sm:$0xf0]  ;;  %v1695_v55 = vld [vmem:[%s2810_s1 + $0x94] sm:$0xf] }
  0x17   :  { %506 = vmatpush.bf16.msra.mxu1 %v1719_v11  ;;  %v1529_v56 = vld [vmem:[%s2810_s1 + $0x98] sm:$0xf0]  ;;  %v1797_v63 = vld [vmem:[%s2809_s2 + $0x8] sm:$0xff]   ;;  %v1700_v34 = vld [vmem:[%s2810_s1 + $0xb4] sm:$0xf0] }
  0x18   :  { %v1699_v35 = vld [vmem:[%s2810_s1 + $0xb4] sm:$0xf] }
  0x1a   :  { %418 = vmatpush.bf16.msra.mxu0 %v1710_v12  ;;  %1818 = vmatpush.bf16.msra.mxu3 %v1710_v12  ;;  %v1705_v12 = vld [vmem:[%s2810_s1 + $0xe4] sm:$0xf] }
  0x1b   :  { %507 = vmatpush.bf16.msra.mxu1 %v1718_v13 }
  0x1e   :  { %419 = vmatpush.bf16.msra.mxu0 %v1709_v14  ;;  %1819 = vmatpush.bf16.msra.mxu3 %v1709_v14  ;;  %v1689_v14 = vld [vmem:[%s2810_s1 + $0x64] sm:$0xf] }
  0x1f   :  { %508 = vmatpush.bf16.msra.mxu1 %v1717_v19 }
  0x21   :  { %420 = vmatmul.bf16.vlgmr.msra.gmra.mxu0 %v1456_v22  ;;  %480 = vmatmul.bf16.vlgmr.msra.gmra.mxu3 %v1552_v23  ;;  %v1511_v22 = vld [vmem:[%s2810_s1 + $0x70] sm:$0xf]  ;;  %v1725_v23 = vld [vmem:[%s2811_s3] sm:$0xff] }
  0x22   :  { %1820 = vmatpush.bf16.msrb.mxu3 %v1724_v1  ;;  %509 = vmatmul.bf16.vlgmr.msra.gmra.mxu1 %v1460_v24  ;;  %v1561_v1 = vld [vmem:[%s2810_s1 + $0xd8] sm:$0xf0]  ;;  %v1692_v24 = vld [vmem:[%s2810_s1 + $0x74] sm:$0xf0] }
  0x23   :  { %v1512_v29 = vor.u32 %v1692_v24, %v1511_v22 }
  0x26   :  { %1821 = vmatpush.bf16.msrb.mxu3 %v1723_v3  ;;  %v1497_v3 = vld [vmem:[%s2810_s1 + $0x58] sm:$0xf0] }
  0x27   :  { %v1500_v6 = vor.u32 %v1687_v2, %v1497_v3 }
  0x2a   :  { %1822 = vmatpush.bf16.msrb.mxu3 %v1722_v5  ;;  %v1564_v5 = vor.u32 %v1703_v0, %v1561_v1  ;;  %v1739_v0 = vunpack.c.l.bf16 %v1797_v63  ;;  %v1740_v1 = vunpack.c.h.bf16 %v1797_v63 }
  0x2e   :  { %1823 = vmatpush.bf16.msrb.mxu3 %v1721_v7  ;;  %v1731_v7 = vld [vmem:[%s2811_s3 + $0x30] sm:$0xff] }
  0x2f   :  { %973 = vmatpush.bf16.msra.mxu2 %v1731_v7 }
  0x31   :  { %425 = vmatmul.bf16.gmra.mxu0 %v1464_v31  ;;  %485 = vmatmul.bf16.gmra.mxu3 %v1560_v32  ;;  %v1516_v31 = vor.u32 %v1691_v27, %v1513_v28  ;;  %v1519_v32 = vld [vmem:[%s2810_s1 + $0x80] sm:$0xf] }
  0x32   :  { %1824 = vmatpush.bf16.msrb.mxu3 %v1720_v9  ;;  %514 = vmatmul.bf16.gmra.mxu1 %v1468_v33  ;;  %v1729_v9 = vld [vmem:[%s2811_s3 + $0x20] sm:$0xff]  ;;  %v1694_v33 = vld [vmem:[%s2810_s1 + $0x84] sm:$0xf0] }
  0x33   :  { %974 = vmatpush.bf16.msra.mxu2 %v1730_v8  ;;  %v1520_v36 = vor.u32 %v1694_v33, %v1519_v32  ;;  %v1543_v33 = vld [vmem:[%s2810_s1 + $0xb0] sm:$0xf] }
  0x36   :  { %1825 = vmatpush.bf16.msrb.mxu3 %v1719_v11  ;;  %v1690_v11 = vld [vmem:[%s2810_s1 + $0x64] sm:$0xf0] }
  0x37   :  { %975 = vmatpush.bf16.msra.mxu2 %v1729_v9  ;;  %v1504_v16 = vor.u32 %v1690_v11, %v1503_v10  ;;  %v1535_v11 = vld [vmem:[%s2810_s1 + $0xa0] sm:$0xf] }
  0x3a   :  { %1826 = vmatpush.bf16.msrb.mxu3 %v1718_v13  ;;  %v1569_v13 = vld [vmem:[%s2810_s1 + $0xe8] sm:$0xf0] }
  0x3b   :  { %v1572_v17 = vor.u32 %v1705_v12, %v1569_v13  ;;  %976 = vmatpush.bf16.msra.mxu2 %v1728_v18  ;;  %v1698_v12 = vld [vmem:[%s2810_s1 + $0xa4] sm:$0xf0]  ;;  %v1697_v13 = vld [vmem:[%s2810_s1 + $0xa4] sm:$0xf] }
  0x3e   :  { %1827 = vmatpush.bf16.msrb.mxu3 %v1717_v19  ;;  %v1508_v19 = vor.u32 %v1689_v14, %v1505_v15  ;;  %v1537_v14 = vld [vmem:[%s2810_s1 + $0xa8] sm:$0xf0] }
  0x3f   :  { %977 = vmatpush.bf16.msra.mxu2 %v1727_v20 }
  0x41   :  { %430 = vmatmul.bf16.gmra.mxu0 %v1472_v40  ;;  %490 = vmatmul.bf16.gmra.mxu3 %v1568_v41  ;;  %v1734_v40 = vld [vmem:[%s2809_s2] sm:$0xff]  }
  0x42   :  { %519 = vmatmul.bf16.gmra.mxu1 %v1476_v42  ;;  %1828 = vmatpush.bf16.msra.mxu3 %v1732_v61  ;;  %v1735_v41 = vunpack.c.l.bf16 %v1734_v40  ;;  %v1736_v42 = vunpack.c.h.bf16 %v1734_v40  ;;  %v1532_v61 = vor.u32 %v1695_v55, %v1529_v56 }
  0x43   :  { %978 = vmatpush.bf16.msra.mxu2 %v1726_v21 }
  0x44   :  { %v757_v46 = vmul.f32 %v1735_v41, %v2235_v43  ;;  %v758_v48 = vmul.f32 %v1736_v42, %v2235_v43 }
  0x46   :  { %1829 = vmatpush.bf16.msra.mxu3 %v1731_v7 }
  0x47   :  { %979 = vmatpush.bf16.msra.mxu2 %v1725_v23 }
  0x4a   :  { %1830 = vmatpush.bf16.msra.mxu3 %v1730_v8 }
  0x4e   :  { %1831 = vmatpush.bf16.msra.mxu3 %v1729_v9 }
  0x51   :  { %435 = vmatmul.bf16.gmra.mxu0 %v1480_v49  ;;  %495 = vmatmul.bf16.gmra.mxu3 %v1576_v50 }
  0x52   :  { %524 = vmatmul.bf16.gmra.mxu1 %v1484_v51  ;;  %1832 = vmatpush.bf16.msra.mxu3 %v1728_v18 }
  0x56   :  { %1833 = vmatpush.bf16.msra.mxu3 %v1727_v20 }
  0x5a   :  { %1834 = vmatpush.bf16.msra.mxu3 %v1726_v21  ;;  %v1798_v21 = vld [vmem:[%s2809_s2 + $0x10] sm:$0xff]  }
  0x5b   :  { %v1743_v22 = vunpack.c.l.bf16 %v1798_v21 }
  0x5d   :  { %v761_v26 = vmul.f32 %v1743_v22, %v2235_v43 }
  0x5e   :  { %1835 = vmatpush.bf16.msra.mxu3 %v1725_v23  ;;  %v1744_v23 = vunpack.c.h.bf16 %v1798_v21 }
  0x60   :  { %v762_v28 = vmul.f32 %v1744_v23, %v2235_v43 }
  0x61   :  { %440 = vmatmul.bf16.gmra.mxu0 %v1488_v58  ;;  %569 = vmatmul.bf16.vlgmr.msrb.gmra.mxu3 %v1556_v59  ;;  %v1528_v59 = vor.u32 %v1696_v54, %v1527_v53 }
  0x62   :  { %529 = vmatmul.bf16.gmra.mxu1 %v1492_v60 }
  0x71   :  { %445 = vmatmul.bf16.gmra.mxu0 %v1496_v4  ;;  %574 = vmatmul.bf16.gmra.mxu3 %v1564_v5  ;;  %v759_v4 = vmul.f32 %v1739_v0, %v2235_v43 }
  0x72   :  { %534 = vmatmul.bf16.gmra.mxu1 %v1500_v6  ;;  %v760_v6 = vmul.f32 %v1740_v1, %v2235_v43 }
  0x81   :  { %450 = vmatmul.bf16.gmra.mxu0 %v1504_v16  ;;  %579 = vmatmul.bf16.gmra.mxu3 %v1572_v17  ;;  %v1536_v17 = vor.u32 %v1698_v12, %v1535_v11 }
  0x82   :  { %539 = vmatmul.bf16.gmra.mxu1 %v1508_v19  ;;  %v1540_v19 = vor.u32 %v1697_v13, %v1537_v14 }
  0x91   :  { %455 = vmatmul.bf16.gmra.mxu0 %v1512_v29  ;;  %584 = vmatmul.bf16.gmra.mxu3 %v1580_v30 }
  0x92   :  { %544 = vmatmul.bf16.gmra.mxu1 %v1516_v31 }
  0x9e   :  { %v421_v37 = vpop.f32.mrf.mxu0 }
  0x9f   :  { %v510_v39 = vpop.f32.mrf.mxu1 }
  0xa0   :  { %v511_v45 = vadd.f32 %v510_v39, %v421_v37  ;;  %v1544_v39 = vor.u32 %v1700_v34, %v1543_v33 }
  0xa1   :  { %460 = vmatmul.bf16.gmra.mxu0 %v1520_v36  ;;  %v1545_v36 = vld [vmem:[%s2810_s1 + $0xb8] sm:$0xf0] }
  0xa2   :  { %549 = vmatmul.bf16.gmra.mxu1 %v1524_v38  ;;  %v789_v51 = vadd.f32 %v757_v46, %v511_v45  ;;  %v1548_v41 = vor.u32 %v1699_v35, %v1545_v36  ;;  %v1799_v45 = vld [vmem:[%s2809_s2 + $0x18] sm:$0xff]  }
  0xa3   :  { %v1747_v46 = vunpack.c.l.bf16 %v1799_v45 }
  0xa4   :  { %v2237_v44 = vpop.f32.mrf.mxu3 }
  0xa6   :  { %v423_v47 = vpop.f32.mrf.mxu0 }
  0xa7   :  { %v512_v49 = vpop.f32.mrf.mxu1 }
  0xa8   :  { %v513_v50 = vadd.f32 %v512_v49, %v423_v47  ;;  %v1748_v47 = vunpack.c.h.bf16 %v1799_v45 }
  0xaa   :  { %v790_v52 = vadd.f32 %v758_v48, %v513_v50  ;;  %v763_v50 = vmul.f32 %v1747_v46, %v2235_v43 }
  0xac   :  { %v2253_v57 = vpop.f32.mrf.mxu3  ;;  %v888_v58 = vpack.c.bf16 %v790_v52, %v789_v51  ;;  %v764_v52 = vmul.f32 %v1748_v47, %v2235_v43 }
  0xae   :  { %980 = vmatmul.bf16.vlgmr.msra.gmra.mxu2 %v888_v58  ;;  %v426_v60 = vpop.f32.mrf.mxu0 }
  0xaf   :  { %v515_v62 = vpop.f32.mrf.mxu1 }
  0xb0   :  { %v516_v3 = vadd.f32 %v515_v62, %v426_v60  ;;  %v1800_v62 = vld [vmem:[%s2809_s2 + $0x20] sm:$0xff]  }
  0xb1   :  { %465 = vmatmul.bf16.gmra.mxu0 %v1528_v59  ;;  %v1751_v63 = vunpack.c.l.bf16 %v1800_v62  ;;  %v1752_v0 = vunpack.c.h.bf16 %v1800_v62 }
  0xb2   :  { %554 = vmatmul.bf16.gmra.mxu1 %v1532_v61  ;;  %v791_v9 = vadd.f32 %v759_v4, %v516_v3  ;;  %v1808_v3 = vld [vmem:[%s2809_s2 + $0x60] sm:$0xff]  }
  0xb4   :  { %v2258_v2 = vpop.f32.mrf.mxu3 }
  0xb6   :  { %v428_v5 = vpop.f32.mrf.mxu0 }
  0xb7   :  { %v517_v7 = vpop.f32.mrf.mxu1 }
  0xb8   :  { %v518_v8 = vadd.f32 %v517_v7, %v428_v5  ;;  %v765_v5 = vmul.f32 %v1751_v63, %v2235_v43  ;;  %v766_v7 = vmul.f32 %v1752_v0, %v2235_v43 }
  0xba   :  { %v792_v10 = vadd.f32 %v760_v6, %v518_v8  ;;  %v1783_v8 = vunpack.c.l.bf16 %v1808_v3 }
  0xbc   :  { %v2274_v15 = vpop.f32.mrf.mxu3  ;;  %v889_v16 = vpack.c.bf16 %v792_v10, %v791_v9  ;;  %v1784_v10 = vunpack.c.h.bf16 %v1808_v3 }
  0xbe   :  { %985 = vmatmul.bf16.gmra.mxu2 %v889_v16  ;;  %v431_v18 = vpop.f32.mrf.mxu0  ;;  %v781_v16 = vmul.f32 %v1783_v8, %v2235_v43 }
  0xbf   :  { %v520_v20 = vpop.f32.mrf.mxu1 }
  0xc0   :  { %v521_v25 = vadd.f32 %v520_v20, %v431_v18 }
  0xc1   :  { %470 = vmatmul.bf16.gmra.mxu0 %v1536_v17  ;;  %v782_v17 = vmul.f32 %v1784_v10, %v2235_v43 }
  0xc2   :  { %559 = vmatmul.bf16.gmra.mxu1 %v1540_v19  ;;  %v793_v31 = vadd.f32 %v761_v26, %v521_v25  ;;  %v1801_v26 = vld [vmem:[%s2809_s2 + $0x28] sm:$0xff]  }
  0xc4   :  { %v2279_v24 = vpop.f32.mrf.mxu3 }
  0xc6   :  { %v433_v27 = vpop.f32.mrf.mxu0 }
  0xc7   :  { %v522_v29 = vpop.f32.mrf.mxu1 }
  0xc8   :  { %v523_v30 = vadd.f32 %v522_v29, %v433_v27 }
  0xca   :  { %v794_v32 = vadd.f32 %v762_v28, %v523_v30  ;;  %v1755_v28 = vunpack.c.l.bf16 %v1801_v26  ;;  %v1809_v30 = vld [vmem:[%s2809_s2 + $0x68] sm:$0xff]  }
  0xcb   :  { %v1787_v34 = vunpack.c.l.bf16 %v1809_v30  ;;  %v1788_v36 = vunpack.c.h.bf16 %v1809_v30 }
  0xcc   :  { %v2295_v37 = vpop.f32.mrf.mxu3  ;;  %v890_v38 = vpack.c.bf16 %v794_v32, %v793_v31 }
  0xcd   :  { %v784_v45 = vmul.f32 %v1788_v36, %v2235_v43 }
  0xce   :  { %990 = vmatmul.bf16.gmra.mxu2 %v890_v38  ;;  %v436_v40 = vpop.f32.mrf.mxu0 }
  0xcf   :  { %v525_v42 = vpop.f32.mrf.mxu1 }
  0xd0   :  { %v526_v49 = vadd.f32 %v525_v42, %v436_v40  ;;  %v783_v42 = vmul.f32 %v1787_v34, %v2235_v43 }
  0xd1   :  { %475 = vmatmul.bf16.gmra.mxu0 %v1544_v39 }
  0xd2   :  { %564 = vmatmul.bf16.gmra.mxu1 %v1548_v41  ;;  %v795_v55 = vadd.f32 %v763_v50, %v526_v49 }
  0xd4   :  { %v2300_v48 = vpop.f32.mrf.mxu3 }
  0xd6   :  { %v438_v51 = vpop.f32.mrf.mxu0 }
  0xd7   :  { %v527_v53 = vpop.f32.mrf.mxu1 }
  0xd8   :  { %v528_v54 = vadd.f32 %v527_v53, %v438_v51 }
  0xda   :  { %v796_v56 = vadd.f32 %v764_v52, %v528_v54  ;;  %v1802_v54 = vld [vmem:[%s2809_s2 + $0x30] sm:$0xff]  }
  0xdc   :  { %v2304_v58 = vpop.f32.mrf.mxu3  ;;  %v891_v59 = vpack.c.bf16 %v796_v56, %v795_v55  ;;  %v1759_v56 = vunpack.c.l.bf16 %v1802_v54 }
  0xde   :  { %995 = vmatmul.bf16.gmra.mxu2 %v891_v59  ;;  %v441_v60 = vpop.f32.mrf.mxu0 }
  0xdf   :  { %v530_v61 = vpop.f32.mrf.mxu1 }
  0xe0   :  { %v531_v4 = vadd.f32 %v530_v61, %v441_v60  ;;  %v1810_v60 = vld [vmem:[%s2809_s2 + $0x70] sm:$0xff]  }
  0xe1   :  { %v1791_v0 = vunpack.c.l.bf16 %v1810_v60  ;;  %v1792_v3 = vunpack.c.h.bf16 %v1810_v60  ;;  %v1805_v60 = vld [vmem:[%s2809_s2 + $0x48] sm:$0xff]  }
  0xe2   :  { %v797_v12 = vadd.f32 %v765_v5, %v531_v4 }
  0xe3   :  { %v785_v8 = vmul.f32 %v1791_v0, %v2235_v43  ;;  %v1772_v0 = vunpack.c.h.bf16 %v1805_v60 }
  0xe4   :  { %v570_v1 = vpop.f32.mrf.mxu3 }
  0xe5   :  { %v571_v14 = vadd.f32 %v570_v1, %v2237_v44  ;;  %v1756_v44 = vunpack.c.h.bf16 %v1801_v26 }
  0xe6   :  { %v443_v6 = vpop.f32.mrf.mxu0 }
  0xe7   :  { %v532_v9 = vpop.f32.mrf.mxu1  ;;  %v813_v22 = vadd.f32 %v781_v16, %v571_v14  ;;  %v768_v33 = vmul.f32 %v1756_v44, %v2235_v43 }
  0xe8   :  { %v533_v11 = vadd.f32 %v532_v9, %v443_v6  ;;  %v786_v9 = vmul.f32 %v1792_v3, %v2235_v43 }
  0xea   :  { %v798_v13 = vadd.f32 %v766_v7, %v533_v11 }
  0xec   :  { %v572_v18 = vpop.f32.mrf.mxu3  ;;  %v892_v19 = vpack.c.bf16 %v798_v13, %v797_v12 }
  0xed   :  { %v573_v20 = vadd.f32 %v572_v18, %v2253_v57  ;;  %v767_v57 = vmul.f32 %v1755_v28, %v2235_v43  ;;  %v1803_v18 = vld [vmem:[%s2809_s2 + $0x38] sm:$0xff]  }
  0xee   :  { %1000 = vmatmul.bf16.gmra.mxu2 %v892_v19  ;;  %v446_v21 = vpop.f32.mrf.mxu0 }
  0xef   :  { %v814_v23 = vadd.f32 %v782_v17, %v573_v20  ;;  %v535_v25 = vpop.f32.mrf.mxu1  ;;  %v1763_v20 = vunpack.c.l.bf16 %v1803_v18 }
  0xf0   :  { %v536_v31 = vadd.f32 %v535_v25, %v446_v21 }
  0xf1   :  { %v900_v27 = vpack.c.bf16 %v814_v23, %v813_v22  ;;  %v1811_v22 = vld [vmem:[%s2809_s2 + $0x78] sm:$0xff]  }
  0xf2   :  { %v799_v39 = vadd.f32 %v767_v57, %v536_v31  ;;  %v1796_v44 = vunpack.c.h.bf16 %v1811_v22 }
  0xf3   :  { %1040 = vmatmul.bf16.vlgmr.msra.gmra.mxu3 %v900_v27  ;;  %v1795_v27 = vunpack.c.l.bf16 %v1811_v22 }
  0xf4   :  { %v575_v29 = vpop.f32.mrf.mxu3 }
  0xf5   :  { %v576_v41 = vadd.f32 %v575_v29, %v2258_v2  ;;  %v1760_v2 = vunpack.c.h.bf16 %v1802_v54 }
  0xf6   :  { %v448_v32 = vpop.f32.mrf.mxu0 }
  0xf7   :  { %v537_v35 = vpop.f32.mrf.mxu1  ;;  %v815_v51 = vadd.f32 %v783_v42, %v576_v41  ;;  %v770_v63 = vmul.f32 %v1760_v2, %v2235_v43  ;;  %v1804_v42 = vld [vmem:[%s2809_s2 + $0x40] sm:$0xff]  }
  0xf8   :  { %v538_v38 = vadd.f32 %v537_v35, %v448_v32  ;;  %v787_v32 = vmul.f32 %v1795_v27, %v2235_v43  ;;  %v2362_v2 = vld [vmem:[%s2813_s4] ss:$0 sm:$0xff] }
  0xfa   :  { %v800_v40 = vadd.f32 %v768_v33, %v538_v38  ;;  %v788_v33 = vmul.f32 %v1796_v44, %v2235_v43 }
  0xfc   :  { %v577_v46 = vpop.f32.mrf.mxu3  ;;  %v893_v47 = vpack.c.bf16 %v800_v40, %v799_v39 }
  0xfd   :  { %v578_v49 = vadd.f32 %v577_v46, %v2274_v15  ;;  %v769_v15 = vmul.f32 %v1759_v56, %v2235_v43  ;;  %v1767_v46 = vunpack.c.l.bf16 %v1804_v42 }
  0xfe   :  { %1005 = vmatmul.bf16.gmra.mxu2 %v893_v47  ;;  %v451_v50 = vpop.f32.mrf.mxu0 }
  0xff   :  { %v816_v52 = vadd.f32 %v784_v45, %v578_v49  ;;  %v540_v53 = vpop.f32.mrf.mxu1  ;;  %v773_v49 = vmul.f32 %v1767_v46, %v2235_v43 }
 0x100   :  { %v541_v61 = vadd.f32 %v540_v53, %v451_v50 }
 0x101   :  { %v901_v55 = vpack.c.bf16 %v816_v52, %v815_v51 }
 0x102   :  { %v801_v5 = vadd.f32 %v769_v15, %v541_v61  ;;  %v2370_v61 = vld [vmem:[%s2814_s5] ss:$0 sm:$0xff] }
 0x103   :  { %1045 = vmatmul.bf16.gmra.mxu3 %v901_v55 }
 0x104   :  { %v580_v59 = vpop.f32.mrf.mxu3 }
 0x105   :  { %v581_v7 = vadd.f32 %v580_v59, %v2279_v24  ;;  %v1764_v24 = vunpack.c.h.bf16 %v1803_v18  ;;  %v1806_v18 = vld [vmem:[%s2809_s2 + $0x50] sm:$0xff]  }
 0x106   :  { %v453_v62 = vpop.f32.mrf.mxu0 }
 0x107   :  { %v542_v1 = vpop.f32.mrf.mxu1  ;;  %v817_v14 = vadd.f32 %v785_v8, %v581_v7  ;;  %v772_v26 = vmul.f32 %v1764_v24, %v2235_v43 }
 0x108   :  { %v543_v4 = vadd.f32 %v542_v1, %v453_v62  ;;  %v1771_v62 = vunpack.c.l.bf16 %v1805_v60 }
 0x10a   :  { %v802_v6 = vadd.f32 %v770_v63, %v543_v4  ;;  %v775_v4 = vmul.f32 %v1771_v62, %v2235_v43 }
 0x10c   :  { %v582_v10 = vpop.f32.mrf.mxu3  ;;  %v894_v11 = vpack.c.bf16 %v802_v6, %v801_v5  ;;  %v776_v6 = vmul.f32 %v1772_v0, %v2235_v43 }
 0x10d   :  { %v583_v12 = vadd.f32 %v582_v10, %v2295_v37  ;;  %v771_v37 = vmul.f32 %v1763_v20, %v2235_v43  ;;  %v1775_v20 = vunpack.c.l.bf16 %v1806_v18 }
 0x10e   :  { %1010 = vmatmul.bf16.gmra.mxu2 %v894_v11  ;;  %v456_v13 = vpop.f32.mrf.mxu0 }
 0x10f   :  { %v818_v16 = vadd.f32 %v786_v9, %v583_v12  ;;  %v545_v17 = vpop.f32.mrf.mxu1 }
 0x110   :  { %v546_v23 = vadd.f32 %v545_v17, %v456_v13 }
 0x111   :  { %v902_v19 = vpack.c.bf16 %v818_v16, %v817_v14 }
 0x112   :  { %v803_v30 = vadd.f32 %v771_v37, %v546_v23  ;;  %v777_v37 = vmul.f32 %v1775_v20, %v2235_v43 }
 0x113   :  { %1050 = vmatmul.bf16.gmra.mxu3 %v902_v19 }
 0x114   :  { %v585_v21 = vpop.f32.mrf.mxu3 }
 0x115   :  { %v586_v57 = vadd.f32 %v585_v21, %v2300_v48  ;;  %v1768_v48 = vunpack.c.h.bf16 %v1804_v42  ;;  %v1776_v21 = vunpack.c.h.bf16 %v1806_v18 }
 0x116   :  { %v458_v25 = vpop.f32.mrf.mxu0 }
 0x117   :  { %v547_v28 = vpop.f32.mrf.mxu1  ;;  %v819_v39 = vadd.f32 %v787_v32, %v586_v57  ;;  %v774_v51 = vmul.f32 %v1768_v48, %v2235_v43 }
 0x118   :  { %v548_v29 = vadd.f32 %v547_v28, %v458_v25 }
 0x11a   :  { %v804_v31 = vadd.f32 %v772_v26, %v548_v29  ;;  %v778_v26 = vmul.f32 %v1776_v21, %v2235_v43 }
 0x11c   :  { %v587_v34 = vpop.f32.mrf.mxu3  ;;  %v895_v35 = vpack.c.bf16 %v804_v31, %v803_v30 }
 0x11d   :  { %v588_v36 = vadd.f32 %v587_v34, %v2304_v58 }
 0x11e   :  { %1015 = vmatmul.bf16.gmra.mxu2 %v895_v35  ;;  %v461_v38 = vpop.f32.mrf.mxu0  ;;  %v1807_v35 = vld [vmem:[%s2809_s2 + $0x58] sm:$0xff]  }
 0x11f   :  { %v820_v40 = vadd.f32 %v788_v33, %v588_v36  ;;  %v550_v41 = vpop.f32.mrf.mxu1 }
 0x120   :  { %v551_v47 = vadd.f32 %v550_v41, %v461_v38  ;;  %v1779_v38 = vunpack.c.l.bf16 %v1807_v35 }
 0x121   :  { %v903_v45 = vpack.c.bf16 %v820_v40, %v819_v39  ;;  %v1780_v40 = vunpack.c.h.bf16 %v1807_v35 }
 0x122   :  { %v805_v53 = vadd.f32 %v773_v49, %v551_v47 }
 0x123   :  { %1055 = vmatmul.bf16.gmra.mxu3 %v903_v45  ;;  %v779_v45 = vmul.f32 %v1779_v38, %v2235_v43  ;;  %v780_v48 = vmul.f32 %v1780_v40, %v2235_v43 }
 0x126   :  { %v463_v50 = vpop.f32.mrf.mxu0 }
 0x127   :  { %v552_v58 = vpop.f32.mrf.mxu1 }
 0x128   :  { %v553_v52 = vadd.f32 %v552_v58, %v463_v50 }
 0x12a   :  { %v806_v54 = vadd.f32 %v774_v51, %v553_v52 }
 0x12c   :  { %v896_v55 = vpack.c.bf16 %v806_v54, %v805_v53 }
 0x12e   :  { %1020 = vmatmul.bf16.gmra.mxu2 %v896_v55  ;;  %v466_v56 = vpop.f32.mrf.mxu0 }
 0x12f   :  { %v555_v59 = vpop.f32.mrf.mxu1 }
 0x130   :  { %v556_v3 = vadd.f32 %v555_v59, %v466_v56 }
 0x131   :  { %v981_v15 = vpop.f32.mrf.mxu2 }
 0x132   :  { %v982_v63 = vadd.f32 %v2362_v2, %v981_v15  ;;  %v807_v10 = vadd.f32 %v775_v4, %v556_v3 }
 0x134   :  { %v2374_v1 = vadd.f32 %v2370_v61, %v982_v63 }
 0x136   :  { %1097 = vmax.xlane.f32.xlu0 %v2374_v1  ;;  %v468_v5 = vpop.f32.mrf.mxu0 }
 0x137   :  { %v557_v7 = vpop.f32.mrf.mxu1 }
 0x138   :  { %v558_v8 = vadd.f32 %v557_v7, %v468_v5 }
 0x139   :  { %v983_v9 = vpop.f32.mrf.mxu2 }
 0x13a   :  { %v808_v11 = vadd.f32 %v776_v6, %v558_v8  ;;  %v984_v12 = vadd.f32 %v2362_v2, %v983_v9 }
 0x13c   :  { %v897_v13 = vpack.c.bf16 %v808_v11, %v807_v10  ;;  %v2381_v14 = vadd.f32 %v2370_v61, %v984_v12 }
 0x13e   :  { %1025 = vmatmul.bf16.gmra.mxu2 %v897_v13  ;;  %1099 = vmax.xlane.f32.xlu0 %v2381_v14  ;;  %v471_v16 = vpop.f32.mrf.mxu0 }
 0x13f   :  { %v560_v17 = vpop.f32.mrf.mxu1 }
 0x140   :  { %v561_v23 = vadd.f32 %v560_v17, %v471_v16 }
 0x141   :  { %v986_v19 = vpop.f32.mrf.mxu2 }
 0x142   :  { %v987_v24 = vadd.f32 %v2362_v2, %v986_v19  ;;  %v809_v29 = vadd.f32 %v777_v37, %v561_v23 }
 0x144   :  { %v2389_v22 = vadd.f32 %v2370_v61, %v987_v24 }
 0x146   :  { %1101 = vmax.xlane.f32.xlu1 %v2389_v22  ;;  %v473_v25 = vpop.f32.mrf.mxu0 }
 0x147   :  { %v562_v27 = vpop.f32.mrf.mxu1 }
 0x148   :  { %v563_v28 = vadd.f32 %v562_v27, %v473_v25 }
 0x149   :  { %v988_v44 = vpop.f32.mrf.mxu2 }
 0x14a   :  { %v810_v30 = vadd.f32 %v778_v26, %v563_v28  ;;  %v989_v31 = vadd.f32 %v2362_v2, %v988_v44 }
 0x14c   :  { %v898_v57 = vpack.c.bf16 %v810_v30, %v809_v29  ;;  %v2396_v32 = vadd.f32 %v2370_v61, %v989_v31 }
 0x14e   :  { %1030 = vmatmul.bf16.gmra.mxu2 %v898_v57  ;;  %1103 = vmax.xlane.f32.xlu1 %v2396_v32  ;;  %v476_v33 = vpop.f32.mrf.mxu0 }
 0x14f   :  { %v565_v34 = vpop.f32.mrf.mxu1 }
 0x150   :  { %v566_v42 = vadd.f32 %v565_v34, %v476_v33 }
 0x151   :  { %v991_v36 = vpop.f32.mrf.mxu2 }
 0x152   :  { %v992_v39 = vadd.f32 %v2362_v2, %v991_v36  ;;  %v811_v51 = vadd.f32 %v779_v45, %v566_v42 }
 0x154   :  { %v2404_v41 = vadd.f32 %v2370_v61, %v992_v39 }
 0x156   :  { %1105 = vmax.xlane.f32.xlu2 %v2404_v41  ;;  %v478_v46 = vpop.f32.mrf.mxu0 }
 0x157   :  { %v567_v47 = vpop.f32.mrf.mxu1 }
 0x158   :  { %v568_v49 = vadd.f32 %v567_v47, %v478_v46 }
 0x159   :  { %v993_v50 = vpop.f32.mrf.mxu2 }
 0x15a   :  { %v812_v58 = vadd.f32 %v780_v48, %v568_v49  ;;  %v994_v52 = vadd.f32 %v2362_v2, %v993_v50 }
 0x15c   :  { %v899_v53 = vpack.c.bf16 %v812_v58, %v811_v51  ;;  %v2411_v54 = vadd.f32 %v2370_v61, %v994_v52 }
 0x15e   :  { %1035 = vmatmul.bf16.gmra.mxu2 %v899_v53  ;;  %1107 = vmax.xlane.f32.xlu2 %v2411_v54 }
 0x161   :  { %v996_v55 = vpop.f32.mrf.mxu2 }
 0x162   :  { %v997_v56 = vadd.f32 %v2362_v2, %v996_v55 }
 0x164   :  { %v2416_v59 = vadd.f32 %v2370_v61, %v997_v56 }
 0x166   :  { %1109 = vmax.xlane.f32.xlu0 %v2416_v59 }
 0x169   :  { %v998_v43 = vpop.f32.mrf.mxu2 }
 0x16a   :  { %v999_v60 = vadd.f32 %v2362_v2, %v998_v43 }
 0x16c   :  { %v2421_v15 = vadd.f32 %v2370_v61, %v999_v60 }
 0x16e   :  { %1111 = vmax.xlane.f32.xlu1 %v2421_v15 }
 0x171   :  { %v1001_v62 = vpop.f32.mrf.mxu2 }
 0x172   :  { %v1002_v63 = vadd.f32 %v2362_v2, %v1001_v62 }
 0x174   :  { %v2426_v0 = vadd.f32 %v2370_v61, %v1002_v63 }
 0x176   :  { %1113 = vmax.xlane.f32.xlu2 %v2426_v0  ;;  %v1041_v3 = vpop.f32.mrf.mxu3 }
 0x177   :  { %v1042_v4 = vadd.f32 %v2362_v2, %v1041_v3 }
 0x179   :  { %v1003_v5 = vpop.f32.mrf.mxu2  ;;  %v2431_v6 = vadd.f32 %v2370_v61, %v1042_v4 }
 0x17a   :  { %v1004_v7 = vadd.f32 %v2362_v2, %v1003_v5 }
 0x17b   :  { %1145 = vmax.xlane.f32.xlu0 %v2431_v6 }
 0x17c   :  { %v2440_v12 = vadd.f32 %v2370_v61, %v1004_v7 }
 0x17e   :  { %v1043_v8 = vpop.f32.mrf.mxu3 }
 0x17f   :  { %v1044_v9 = vadd.f32 %v2362_v2, %v1043_v8 }
 0x181   :  { %v1006_v10 = vpop.f32.mrf.mxu2  ;;  %v2437_v11 = vadd.f32 %v2370_v61, %v1044_v9 }
 0x182   :  { %v1007_v13 = vadd.f32 %v2362_v2, %v1006_v10 }
 0x183   :  { %1147 = vmax.xlane.f32.xlu1 %v2437_v11  ;;  %1115 = vmax.xlane.f32.xlu0 %v2440_v12 }
 0x184   :  { %v2450_v20 = vadd.f32 %v2370_v61, %v1007_v13 }
 0x186   :  { %v1046_v16 = vpop.f32.mrf.mxu3 }
 0x187   :  { %v1047_v17 = vadd.f32 %v2362_v2, %v1046_v16 }
 0x189   :  { %v1008_v18 = vpop.f32.mrf.mxu2  ;;  %v2447_v19 = vadd.f32 %v2370_v61, %v1047_v17 }
 0x18a   :  { %v1009_v24 = vadd.f32 %v2362_v2, %v1008_v18 }
 0x18b   :  { %1149 = vmax.xlane.f32.xlu2 %v2447_v19  ;;  %1117 = vmax.xlane.f32.xlu1 %v2450_v20 }
 0x18c   :  { %v2457_v25 = vadd.f32 %v2370_v61, %v1009_v24 }
 0x18e   :  { %v1048_v21 = vpop.f32.mrf.mxu3 }
 0x18f   :  { %v1049_v23 = vadd.f32 %v2362_v2, %v1048_v21 }
 0x191   :  { %v1011_v37 = vpop.f32.mrf.mxu2  ;;  %v2460_v26 = vadd.f32 %v2370_v61, %v1049_v23 }
 0x192   :  { %v1012_v27 = vadd.f32 %v2362_v2, %v1011_v37 }
 0x193   :  { %1119 = vmax.xlane.f32.xlu2 %v2457_v25  ;;  %1151 = vmax.xlane.f32.xlu0 %v2460_v26 }
 0x194   :  { %v2470_v31 = vadd.f32 %v2370_v61, %v1012_v27 }
 0x196   :  { %v1051_v28 = vpop.f32.mrf.mxu3 }
 0x197   :  { %v1052_v44 = vadd.f32 %v2362_v2, %v1051_v28 }
 0x199   :  { %v1013_v29 = vpop.f32.mrf.mxu2  ;;  %v2467_v30 = vadd.f32 %v2370_v61, %v1052_v44 }
 0x19a   :  { %v1014_v57 = vadd.f32 %v2362_v2, %v1013_v29 }
 0x19b   :  { %1153 = vmax.xlane.f32.xlu1 %v2467_v30  ;;  %1121 = vmax.xlane.f32.xlu0 %v2470_v31 }
 0x19c   :  { %v2480_v38 = vadd.f32 %v2370_v61, %v1014_v57 }
 0x19e   :  { %v1053_v33 = vpop.f32.mrf.mxu3 }
 0x19f   :  { %v1054_v34 = vadd.f32 %v2362_v2, %v1053_v33 }
 0x1a1   :  { %v1016_v35 = vpop.f32.mrf.mxu2  ;;  %v2477_v36 = vadd.f32 %v2370_v61, %v1054_v34 }
 0x1a2   :  { %v1017_v39 = vadd.f32 %v2362_v2, %v1016_v35 }
 0x1a3   :  { %1155 = vmax.xlane.f32.xlu2 %v2477_v36  ;;  %1123 = vmax.xlane.f32.xlu1 %v2480_v38 }
 0x1a4   :  { %v2487_v48 = vadd.f32 %v2370_v61, %v1017_v39 }
 0x1a6   :  { %v1056_v40 = vpop.f32.mrf.mxu3 }
 0x1a7   :  { %v1057_v42 = vadd.f32 %v2362_v2, %v1056_v40 }
 0x1a9   :  { %v1018_v45 = vpop.f32.mrf.mxu2  ;;  %v1098_v46 = vpop.xlane.xlu0 %1097  ;;  %v2490_v47 = vadd.f32 %v2370_v61, %v1057_v42 }
 0x1aa   :  { %v2493_v49 = vsub.f32 %v2374_v1, %v1098_v46  ;;  %v1019_v51 = vadd.f32 %v2362_v2, %v1018_v45 }
 0x1ab   :  { %1125 = vmax.xlane.f32.xlu2 %v2487_v48  ;;  %1157 = vmax.xlane.f32.xlu0 %v2490_v47 }
 0x1ac   :  { %v1193_v50 = vmul.f32 1.442695, %v2493_v49  ;;  %v2504_v1 = vadd.f32 %v2370_v61, %v1019_v51 }
 0x1ae   :  { %1838 = vpow2.f32 %v1193_v50  ;;  %v1058_v58 = vpop.f32.mrf.mxu3 }
 0x1af   :  { %v1059_v52 = vadd.f32 %v2362_v2, %v1058_v58 }
 0x1b1   :  { %v1021_v53 = vpop.f32.mrf.mxu2  ;;  %v1100_v55 = vpop.xlane.xlu0 %1099  ;;  %v2501_v56 = vadd.f32 %v2370_v61, %v1059_v52 }
 0x1b2   :  { %v2507_v43 = vsub.f32 %v2381_v14, %v1100_v55  ;;  %v1022_v63 = vadd.f32 %v2362_v2, %v1021_v53 }
 0x1b3   :  { %1159 = vmax.xlane.f32.xlu1 %v2501_v56  ;;  %1127 = vmax.xlane.f32.xlu0 %v2504_v1 }
 0x1b4   :  { %v1839_v60 = vpop.eup %1838  ;;  %v1195_v62 = vmul.f32 1.442695, %v2507_v43  ;;  %v2514_v5 = vadd.f32 %v2370_v61, %v1022_v63 }
 0x1b5   :  { %1257 = vadd.xlane.f32.xlu2 %v1839_v60 }
 0x1b6   :  { %1840 = vpow2.f32 %v1195_v62 }
 0x1b9   :  { %v1023_v3 = vpop.f32.mrf.mxu2  ;;  %v1102_v4 = vpop.xlane.xlu1 %1101 }
 0x1ba   :  { %v1024_v7 = vadd.f32 %v2362_v2, %v1023_v3  ;;  %v2518_v14 = vsub.f32 %v2389_v22, %v1102_v4 }
 0x1bb   :  { %1129 = vmax.xlane.f32.xlu1 %v2514_v5 }
 0x1bc   :  { %v1841_v8 = vpop.eup %1840  ;;  %v1197_v9 = vmul.f32 1.442695, %v2518_v14  ;;  %v2523_v10 = vadd.f32 %v2370_v61, %v1024_v7 }
 0x1bd   :  { %1259 = vadd.xlane.f32.xlu0 %v1841_v8 }
 0x1be   :  { %1842 = vpow2.f32 %v1197_v9  ;;  %1131 = vmax.xlane.f32.xlu2 %v2523_v10 }
 0x1c1   :  { %v1026_v13 = vpop.f32.mrf.mxu2  ;;  %v1104_v16 = vpop.xlane.xlu1 %1103 }
 0x1c2   :  { %v1027_v17 = vadd.f32 %v2362_v2, %v1026_v13  ;;  %v2528_v18 = vsub.f32 %v2396_v32, %v1104_v16 }
 0x1c4   :  { %v1843_v22 = vpop.eup %1842  ;;  %v1199_v24 = vmul.f32 1.442695, %v2528_v18  ;;  %v2532_v21 = vadd.f32 %v2370_v61, %v1027_v17 }
 0x1c5   :  { %1261 = vadd.xlane.f32.xlu1 %v1843_v22 }
 0x1c6   :  { %1844 = vpow2.f32 %v1199_v24  ;;  %1133 = vmax.xlane.f32.xlu0 %v2532_v21 }
 0x1c9   :  { %v1028_v23 = vpop.f32.mrf.mxu2  ;;  %v1106_v37 = vpop.xlane.xlu2 %1105 }
 0x1ca   :  { %v1029_v27 = vadd.f32 %v2362_v2, %v1028_v23  ;;  %v2537_v28 = vsub.f32 %v2404_v41, %v1106_v37 }
 0x1cc   :  { %v1845_v44 = vpop.eup %1844  ;;  %v1201_v32 = vmul.f32 1.442695, %v2537_v28  ;;  %v2541_v29 = vadd.f32 %v2370_v61, %v1029_v27 }
 0x1cd   :  { %1263 = vadd.xlane.f32.xlu2 %v1845_v44 }
 0x1ce   :  { %1846 = vpow2.f32 %v1201_v32  ;;  %1135 = vmax.xlane.f32.xlu1 %v2541_v29 }
 0x1d1   :  { %v1031_v57 = vpop.f32.mrf.mxu2  ;;  %v1108_v33 = vpop.xlane.xlu2 %1107 }
 0x1d2   :  { %v1032_v34 = vadd.f32 %v2362_v2, %v1031_v57  ;;  %v2546_v35 = vsub.f32 %v2411_v54, %v1108_v33 }
 0x1d4   :  { %v1847_v39 = vpop.eup %1846  ;;  %v1203_v41 = vmul.f32 1.442695, %v2546_v35  ;;  %v2550_v40 = vadd.f32 %v2370_v61, %v1032_v34 }
 0x1d5   :  { %1265 = vadd.xlane.f32.xlu0 %v1847_v39 }
 0x1d6   :  { %1848 = vpow2.f32 %v1203_v41  ;;  %1137 = vmax.xlane.f32.xlu2 %v2550_v40 }
 0x1d9   :  { %v1033_v42 = vpop.f32.mrf.mxu2  ;;  %v1110_v45 = vpop.xlane.xlu0 %1109 }
 0x1da   :  { %v1034_v46 = vadd.f32 %v2362_v2, %v1033_v42  ;;  %v2555_v50 = vsub.f32 %v2416_v59, %v1110_v45 }
 0x1dc   :  { %v1849_v51 = vpop.eup %1848  ;;  %v1205_v54 = vmul.f32 1.442695, %v2555_v50  ;;  %v2559_v58 = vadd.f32 %v2370_v61, %v1034_v46 }
 0x1dd   :  { %1267 = vadd.xlane.f32.xlu1 %v1849_v51 }
 0x1de   :  { %1850 = vpow2.f32 %v1205_v54  ;;  %1139 = vmax.xlane.f32.xlu0 %v2559_v58 }
 0x1e1   :  { %v1036_v52 = vpop.f32.mrf.mxu2  ;;  %v1112_v53 = vpop.xlane.xlu1 %1111 }
 0x1e2   :  { %v1037_v55 = vadd.f32 %v2362_v2, %v1036_v52  ;;  %v2564_v60 = vsub.f32 %v2421_v15, %v1112_v53 }
 0x1e4   :  { %v1851_v62 = vpop.eup %1850  ;;  %v1207_v59 = vmul.f32 1.442695, %v2564_v60  ;;  %v2568_v63 = vadd.f32 %v2370_v61, %v1037_v55 }
 0x1e5   :  { %1269 = vadd.xlane.f32.xlu2 %v1851_v62 }
 0x1e6   :  { %1852 = vpow2.f32 %v1207_v59  ;;  %1141 = vmax.xlane.f32.xlu1 %v2568_v63 }
 0x1e9   :  { %v1038_v3 = vpop.f32.mrf.mxu2  ;;  %v1114_v4 = vpop.xlane.xlu2 %1113 }
 0x1ea   :  { %v1039_v7 = vadd.f32 %v2362_v2, %v1038_v3  ;;  %v2573_v8 = vsub.f32 %v2426_v0, %v1114_v4 }
 0x1ec   :  { %v1853_v9 = vpop.eup %1852  ;;  %v1209_v15 = vmul.f32 1.442695, %v2573_v8  ;;  %v2577_v13 = vadd.f32 %v2370_v61, %v1039_v7 }
 0x1ed   :  { %1271 = vadd.xlane.f32.xlu0 %v1853_v9 }
 0x1ee   :  { %1854 = vpow2.f32 %v1209_v15  ;;  %1143 = vmax.xlane.f32.xlu2 %v2577_v13  ;;  %v1146_v16 = vpop.xlane.xlu0 %1145 }
 0x1ef   :  { %v2581_v17 = vsub.f32 %v2431_v6, %v1146_v16 }
 0x1f1   :  { %v1241_v22 = vmul.f32 1.442695, %v2581_v17 }
 0x1f3   :  { %1856 = vpow2.f32 %v1241_v22 }
 0x1f4   :  { %v1855_v2 = vpop.eup %1854 }
 0x1f5   :  { %1273 = vadd.xlane.f32.xlu1 %v1855_v2 }
 0x1f6   :  { %v1148_v0 = vpop.xlane.xlu1 %1147  ;;  %v1116_v24 = vpop.xlane.xlu0 %1115 }
 0x1f7   :  { %v2585_v23 = vsub.f32 %v2437_v11, %v1148_v0  ;;  %v2588_v61 = vsub.f32 %v2440_v12, %v1116_v24 }
 0x1f9   :  { %v1857_v37 = vpop.eup %1856  ;;  %v1243_v27 = vmul.f32 1.442695, %v2585_v23  ;;  %v1211_v44 = vmul.f32 1.442695, %v2588_v61 }
 0x1fa   :  { %1305 = vadd.xlane.f32.xlu2 %v1857_v37 }
 0x1fb   :  { %1858 = vpow2.f32 %v1243_v27 }
 0x1fc   :  { %1860 = vpow2.f32 %v1211_v44 }
 0x1fe   :  { %v1150_v6 = vpop.xlane.xlu2 %1149  ;;  %v1118_v32 = vpop.xlane.xlu1 %1117 }
 0x1ff   :  { %v2593_v57 = vsub.f32 %v2447_v19, %v1150_v6  ;;  %v2596_v33 = vsub.f32 %v2450_v20, %v1118_v32 }
 0x201   :  { %v1859_v11 = vpop.eup %1858  ;;  %v1245_v12 = vmul.f32 1.442695, %v2593_v57  ;;  %v1213_v34 = vmul.f32 1.442695, %v2596_v33 }
 0x202   :  { %v1861_v39 = vpop.eup %1860  ;;  %1307 = vadd.xlane.f32.xlu0 %v1859_v11 }
 0x203   :  { %1862 = vpow2.f32 %v1245_v12  ;;  %1275 = vadd.xlane.f32.xlu2 %v1861_v39 }
 0x204   :  { %1864 = vpow2.f32 %v1213_v34 }
 0x206   :  { %v1120_v41 = vpop.xlane.xlu2 %1119  ;;  %v1152_v42 = vpop.xlane.xlu0 %1151 }
 0x207   :  { %v2601_v45 = vsub.f32 %v2457_v25, %v1120_v41  ;;  %v2604_v19 = vsub.f32 %v2460_v26, %v1152_v42 }
 0x209   :  { %v1863_v20 = vpop.eup %1862  ;;  %v1215_v46 = vmul.f32 1.442695, %v2601_v45  ;;  %v1247_v51 = vmul.f32 1.442695, %v2604_v19 }
 0x20a   :  { %v1865_v54 = vpop.eup %1864  ;;  %1309 = vadd.xlane.f32.xlu1 %v1863_v20 }
 0x20b   :  { %1866 = vpow2.f32 %v1215_v46  ;;  %1277 = vadd.xlane.f32.xlu0 %v1865_v54 }
 0x20c   :  { %1868 = vpow2.f32 %v1247_v51 }
 0x20e   :  { %v1154_v52 = vpop.xlane.xlu1 %1153  ;;  %v1122_v53 = vpop.xlane.xlu0 %1121 }
 0x20f   :  { %v2609_v55 = vsub.f32 %v2467_v30, %v1154_v52  ;;  %v2612_v25 = vsub.f32 %v2470_v31, %v1122_v53 }
 0x211   :  { %v1867_v26 = vpop.eup %1866  ;;  %v1249_v62 = vmul.f32 1.442695, %v2609_v55  ;;  %v1217_v59 = vmul.f32 1.442695, %v2612_v25 }
 0x212   :  { %v1869_v3 = vpop.eup %1868  ;;  %1279 = vadd.xlane.f32.xlu1 %v1867_v26 }
 0x213   :  { %1870 = vpow2.f32 %v1249_v62  ;;  %1311 = vadd.xlane.f32.xlu2 %v1869_v3 }
 0x214   :  { %1872 = vpow2.f32 %v1217_v59 }
 0x216   :  { %v2616_v4 = vpop.xlane.xlu2 %1155  ;;  %v1124_v7 = vpop.xlane.xlu1 %1123 }
 0x217   :  { %v2619_v9 = vsub.f32 %v2480_v38, %v1124_v7 }
 0x219   :  { %v1871_v30 = vpop.eup %1870  ;;  %v1219_v31 = vmul.f32 1.442695, %v2619_v9 }
 0x21a   :  { %v1873_v15 = vpop.eup %1872  ;;  %1313 = vadd.xlane.f32.xlu0 %v1871_v30 }
 0x21b   :  { %1281 = vadd.xlane.f32.xlu2 %v1873_v15  ;;  %1874 = vpow2.f32 %v1219_v31 }
 0x21e   :  { %v1126_v16 = vpop.xlane.xlu2 %1125  ;;  %v2622_v22 = vpop.xlane.xlu0 %1157 }
 0x21f   :  { %v2625_v2 = vsub.f32 %v2487_v48, %v1126_v16 }
 0x221   :  { %v1221_v0 = vmul.f32 1.442695, %v2625_v2  ;;  %v1875_v24 = vpop.eup %1874 }
 0x222   :  { %1283 = vadd.xlane.f32.xlu0 %v1875_v24 }
 0x223   :  { %1876 = vpow2.f32 %v1221_v0 }
 0x226   :  { %v2628_v38 = vpop.xlane.xlu1 %1159  ;;  %v1128_v37 = vpop.xlane.xlu0 %1127 }
 0x227   :  { %v2631_v27 = vsub.f32 %v2504_v1, %v1128_v37 }
 0x228   :  { %v1258_v44 = vpop.xlane.xlu2 %1257 }
 0x229   :  { %v1877_v6 = vpop.eup %1876  ;;  %v1223_v32 = vmul.f32 1.442695, %v2631_v27  ;;  %1878 = vlog2.f32 %v1258_v44 }
 0x22a   :  { %1285 = vadd.xlane.f32.xlu1 %v1877_v6 }
 0x22b   :  { %1880 = vpow2.f32 %v1223_v32 }
 0x22e   :  { %v1130_v48 = vpop.xlane.xlu1 %1129 }
 0x22f   :  { %v1879_v11 = vpop.eup %1878  ;;  %v2635_v12 = vsub.f32 %v2514_v5, %v1130_v48 }
 0x230   :  { %v1322_v34 = vmul.f32 0.6931472, %v1879_v11  ;;  %v1260_v39 = vpop.xlane.xlu0 %1259 }
 0x231   :  { %v1225_v41 = vmul.f32 1.442695, %v2635_v12  ;;  %1882 = vlog2.f32 %v1260_v39  ;;  %v1132_v42 = vpop.xlane.xlu2 %1131  ;;  %v1881_v1 = vpop.eup %1880 }
 0x232   :  { %v1385_v20 = vsub.f32 %v2493_v49, %v1322_v34  ;;  %v2640_v46 = vsub.f32 %v2523_v10, %v1132_v42  ;;  %1287 = vadd.xlane.f32.xlu2 %v1881_v1  ;;  %v2680_v1 = vsub.f32 %v2490_v47, %v2622_v22  ;;  %v2693_v22 = vsub.f32 %v2501_v56, %v2628_v38 }
 0x233   :  { %1884 = vpow2.f32 %v1225_v41  ;;  %v2706_v38 = vsub.f32 %v2477_v36, %v2616_v4 }
 0x234   :  { %1417 = vst [vmem:[%s2815_s6] sm:$0xff] %v1385_v20  ;;  %v1227_v5 = vmul.f32 1.442695, %v2640_v46 }
 0x236   :  { %1886 = vpow2.f32 %v1227_v5 }
 0x237   :  { %v1883_v51 = vpop.eup %1882 }
 0x238   :  { %v1324_v54 = vmul.f32 0.6931472, %v1883_v51  ;;  %v1262_v52 = vpop.xlane.xlu1 %1261 }
 0x239   :  { %v1885_v53 = vpop.eup %1884  ;;  %1888 = vlog2.f32 %v1262_v52  ;;  %v1134_v26 = vpop.xlane.xlu0 %1133 }
 0x23a   :  { %v1386_v49 = vsub.f32 %v2507_v43, %v1324_v54  ;;  %v2648_v10 = vsub.f32 %v2532_v21, %v1134_v26  ;;  %1289 = vadd.xlane.f32.xlu0 %v1885_v53 }
 0x23c   :  { %v1887_v62 = vpop.eup %1886  ;;  %1418 = vst [vmem:[%s2815_s6 + $0x8] sm:$0xff] %v1386_v49  ;;  %v1229_v59 = vmul.f32 1.442695, %v2648_v10 }
 0x23d   :  { %1291 = vadd.xlane.f32.xlu1 %v1887_v62 }
 0x23e   :  { %1890 = vpow2.f32 %v1229_v59 }
 0x23f   :  { %v1889_v3 = vpop.eup %1888 }
 0x240   :  { %v1326_v7 = vmul.f32 0.6931472, %v1889_v3  ;;  %v1264_v30 = vpop.xlane.xlu2 %1263 }
 0x241   :  { %1892 = vlog2.f32 %v1264_v30  ;;  %v1136_v31 = vpop.xlane.xlu1 %1135 }
 0x242   :  { %v1387_v43 = vsub.f32 %v2518_v14, %v1326_v7  ;;  %v2656_v21 = vsub.f32 %v2541_v29, %v1136_v31 }
 0x244   :  { %v1891_v15 = vpop.eup %1890  ;;  %1419 = vst [vmem:[%s2815_s6 + $0x10] sm:$0xff] %v1387_v43  ;;  %v1231_v16 = vmul.f32 1.442695, %v2656_v21  ;;  %v1251_v43 = vmul.f32 1.442695, %v2706_v38 }
 0x245   :  { %1293 = vadd.xlane.f32.xlu2 %v1891_v15 }
 0x246   :  { %1894 = vpow2.f32 %v1231_v16 }
 0x247   :  { %v1893_v0 = vpop.eup %1892 }
 0x248   :  { %v1328_v24 = vmul.f32 0.6931472, %v1893_v0  ;;  %v1266_v37 = vpop.xlane.xlu0 %1265 }
 0x249   :  { %1896 = vlog2.f32 %v1266_v37  ;;  %v1138_v44 = vpop.xlane.xlu2 %1137 }
 0x24a   :  { %v1388_v6 = vsub.f32 %v2528_v18, %v1328_v24  ;;  %v2664_v14 = vsub.f32 %v2550_v40, %v1138_v44 }
 0x24c   :  { %v1895_v29 = vpop.eup %1894  ;;  %1420 = vst [vmem:[%s2815_s6 + $0x18] sm:$0xff] %v1388_v6  ;;  %v1233_v32 = vmul.f32 1.442695, %v2664_v14 }
 0x24d   :  { %1295 = vadd.xlane.f32.xlu0 %v1895_v29 }
 0x24e   :  { %1898 = vpow2.f32 %v1233_v32 }
 0x24f   :  { %v1897_v48 = vpop.eup %1896 }
 0x250   :  { %v1330_v11 = vmul.f32 0.6931472, %v1897_v48  ;;  %v1268_v34 = vpop.xlane.xlu1 %1267 }
 0x251   :  { %1900 = vlog2.f32 %v1268_v34  ;;  %v1140_v39 = vpop.xlane.xlu0 %1139 }
 0x252   :  { %v1389_v41 = vsub.f32 %v2537_v28, %v1330_v11  ;;  %v2672_v18 = vsub.f32 %v2559_v58, %v1140_v39  ;;  %v1253_v28 = vmul.f32 1.442695, %v2680_v1 }
 0x254   :  { %v1899_v40 = vpop.eup %1898  ;;  %1421 = vst [vmem:[%s2815_s6 + $0x20] sm:$0xff] %v1389_v41  ;;  %v1235_v42 = vmul.f32 1.442695, %v2672_v18 }
 0x255   :  { %1297 = vadd.xlane.f32.xlu1 %v1899_v40 }
 0x256   :  { %1902 = vpow2.f32 %v1235_v42 }
 0x257   :  { %v1901_v20 = vpop.eup %1900 }
 0x258   :  { %v1332_v5 = vmul.f32 0.6931472, %v1901_v20  ;;  %v1270_v51 = vpop.xlane.xlu2 %1269 }
 0x259   :  { %1904 = vlog2.f32 %v1270_v51  ;;  %v1142_v58 = vpop.xlane.xlu1 %1141 }
 0x25a   :  { %v1390_v54 = vsub.f32 %v2546_v35, %v1332_v5  ;;  %v2685_v52 = vsub.f32 %v2568_v63, %v1142_v58  ;;  %1906 = vpow2.f32 %v1253_v28  ;;  %v1255_v63 = vmul.f32 1.442695, %v2693_v22 }
 0x25c   :  { %v1903_v53 = vpop.eup %1902  ;;  %1422 = vst [vmem:[%s2815_s6 + $0x28] sm:$0xff] %v1390_v54  ;;  %v1237_v47 = vmul.f32 1.442695, %v2685_v52 }
 0x25d   :  { %1299 = vadd.xlane.f32.xlu2 %v1903_v53 }
 0x25e   :  { %1908 = vpow2.f32 %v1237_v47 }
 0x25f   :  { %v1905_v26 = vpop.eup %1904 }
 0x260   :  { %v1334_v49 = vmul.f32 0.6931472, %v1905_v26  ;;  %v1272_v35 = vpop.xlane.xlu0 %1271  ;;  %v1907_v7 = vpop.eup %1906 }
 0x261   :  { %1910 = vlog2.f32 %v1272_v35  ;;  %v1144_v62 = vpop.xlane.xlu2 %1143 }
 0x262   :  { %v1391_v59 = vsub.f32 %v2555_v50, %v1334_v49  ;;  %v2698_v3 = vsub.f32 %v2577_v13, %v1144_v62  ;;  %1912 = vpow2.f32 %v1255_v63 }
 0x264   :  { %v1909_v30 = vpop.eup %1908  ;;  %1423 = vst [vmem:[%s2815_s6 + $0x30] sm:$0xff] %v1391_v59  ;;  %v1239_v56 = vmul.f32 1.442695, %v2698_v3 }
 0x265   :  { %1301 = vadd.xlane.f32.xlu0 %v1909_v30  ;;  %1317 = vadd.xlane.f32.xlu2 %v1907_v7 }
 0x266   :  { %1914 = vpow2.f32 %v1239_v56 }
 0x267   :  { %v1911_v50 = vpop.eup %1910 }
 0x268   :  { %v1336_v31 = vmul.f32 0.6931472, %v1911_v50  ;;  %v1274_v13 = vpop.xlane.xlu1 %1273  ;;  %v1913_v16 = vpop.eup %1912 }
 0x269   :  { %1916 = vlog2.f32 %v1274_v13 }
 0x26a   :  { %v1392_v15 = vsub.f32 %v2564_v60, %v1336_v31  ;;  %1918 = vpow2.f32 %v1251_v43 }
 0x26c   :  { %v1915_v0 = vpop.eup %1914  ;;  %1424 = vst [vmem:[%s2815_s6 + $0x38] sm:$0xff] %v1392_v15 }
 0x26d   :  { %1319 = vadd.xlane.f32.xlu0 %v1913_v16  ;;  %1303 = vadd.xlane.f32.xlu1 %v1915_v0  ;;  %v1306_v36 = vpop.xlane.xlu2 %1305 }
 0x26e   :  { %1920 = vlog2.f32 %v1306_v36 }
 0x26f   :  { %v1917_v4 = vpop.eup %1916 }
 0x270   :  { %v1338_v24 = vmul.f32 0.6931472, %v1917_v4  ;;  %v1919_v44 = vpop.eup %1918 }
 0x272   :  { %v1393_v37 = vsub.f32 %v2573_v8, %v1338_v24 }
 0x274   :  { %v1921_v6 = vpop.eup %1920  ;;  %1425 = vst [vmem:[%s2815_s6 + $0x40] sm:$0xff] %v1393_v37 }
 0x275   :  { %v1370_v60 = vmul.f32 0.6931472, %v1921_v6  ;;  %1315 = vadd.xlane.f32.xlu1 %v1919_v44  ;;  %v1308_v29 = vpop.xlane.xlu0 %1307 }
 0x276   :  { %v1276_v32 = vpop.xlane.xlu2 %1275  ;;  %1922 = vlog2.f32 %v1308_v29 }
 0x277   :  { %v1409_v48 = vsub.f32 %v2581_v17, %v1370_v60  ;;  %1924 = vlog2.f32 %v1276_v32 }
 0x279   :  { %1441 = vst [vmem:[%s2815_s6 + $0xc0] sm:$0xff] %v1409_v48 }
 0x27c   :  { %v1923_v11 = vpop.eup %1922 }
 0x27d   :  { %v1925_v8 = vpop.eup %1924  ;;  %v1372_v34 = vmul.f32 0.6931472, %v1923_v11  ;;  %v1310_v39 = vpop.xlane.xlu1 %1309 }
 0x27e   :  { %v1340_v41 = vmul.f32 0.6931472, %v1925_v8  ;;  %1926 = vlog2.f32 %v1310_v39  ;;  %v1278_v40 = vpop.xlane.xlu0 %1277 }
 0x27f   :  { %v1410_v42 = vsub.f32 %v2585_v23, %v1372_v34  ;;  %1928 = vlog2.f32 %v1278_v40 }
 0x280   :  { %v1394_v20 = vsub.f32 %v2588_v61, %v1340_v41 }
 0x281   :  { %1442 = vst [vmem:[%s2815_s6 + $0xc8] sm:$0xff] %v1410_v42 }
 0x282   :  { %1426 = vst [vmem:[%s2815_s6 + $0x48] sm:$0xff] %v1394_v20 }
 0x284   :  { %v1927_v17 = vpop.eup %1926 }
 0x285   :  { %v1929_v5 = vpop.eup %1928  ;;  %v1374_v51 = vmul.f32 0.6931472, %v1927_v17  ;;  %v1280_v28 = vpop.xlane.xlu1 %1279 }
 0x286   :  { %v1342_v58 = vmul.f32 0.6931472, %v1929_v5  ;;  %1930 = vlog2.f32 %v1280_v28  ;;  %v1312_v54 = vpop.xlane.xlu2 %1311 }
 0x287   :  { %v1411_v23 = vsub.f32 %v2593_v57, %v1374_v51  ;;  %1932 = vlog2.f32 %v1312_v54 }
 0x288   :  { %v1395_v61 = vsub.f32 %v2596_v33, %v1342_v58 }
 0x289   :  { %1443 = vst [vmem:[%s2815_s6 + $0xd0] sm:$0xff] %v1411_v23 }
 0x28a   :  { %1427 = vst [vmem:[%s2815_s6 + $0x50] sm:$0xff] %v1395_v61 }
 0x28c   :  { %v1931_v53 = vpop.eup %1930 }
 0x28d   :  { %v1933_v47 = vpop.eup %1932  ;;  %v1344_v26 = vmul.f32 0.6931472, %v1931_v53  ;;  %v1314_v49 = vpop.xlane.xlu0 %1313 }
 0x28e   :  { %v1376_v35 = vmul.f32 0.6931472, %v1933_v47  ;;  %v1282_v63 = vpop.xlane.xlu2 %1281  ;;  %1934 = vlog2.f32 %v1314_v49 }
 0x28f   :  { %v1396_v57 = vsub.f32 %v2601_v45, %v1344_v26  ;;  %1936 = vlog2.f32 %v1282_v63 }
 0x290   :  { %v1412_v33 = vsub.f32 %v2604_v19, %v1376_v35 }
 0x291   :  { %1428 = vst [vmem:[%s2815_s6 + $0x58] sm:$0xff] %v1396_v57 }
 0x292   :  { %1444 = vst [vmem:[%s2815_s6 + $0xd8] sm:$0xff] %v1412_v33 }
 0x294   :  { %v1935_v62 = vpop.eup %1934 }
 0x295   :  { %v1937_v59 = vpop.eup %1936  ;;  %v1378_v7 = vmul.f32 0.6931472, %v1935_v62  ;;  %v1284_v56 = vpop.xlane.xlu0 %1283 }
 0x296   :  { %v1346_v30 = vmul.f32 0.6931472, %v1937_v59  ;;  %1938 = vlog2.f32 %v1284_v56 }
 0x297   :  { %v1413_v50 = vsub.f32 %v2609_v55, %v1378_v7 }
 0x298   :  { %v1397_v45 = vsub.f32 %v2612_v25, %v1346_v30 }
 0x299   :  { %1445 = vst [vmem:[%s2815_s6 + $0xe0] sm:$0xff] %v1413_v50 }
 0x29a   :  { %1429 = vst [vmem:[%s2815_s6 + $0x60] sm:$0xff] %v1397_v45 }
 0x29c   :  { %v1939_v19 = vpop.eup %1938 }
 0x29d   :  { %v1286_v31 = vpop.xlane.xlu1 %1285  ;;  %v1348_v13 = vmul.f32 0.6931472, %v1939_v19 }
 0x29e   :  { %1940 = vlog2.f32 %v1286_v31 }
 0x29f   :  { %v1398_v43 = vsub.f32 %v2619_v9, %v1348_v13 }
 0x2a1   :  { %1430 = vst [vmem:[%s2815_s6 + $0x68] sm:$0xff] %v1398_v43 }
 0x2a4   :  { %v1941_v55 = vpop.eup %1940 }
 0x2a5   :  { %v1350_v25 = vmul.f32 0.6931472, %v1941_v55  ;;  %v1288_v15 = vpop.xlane.xlu2 %1287 }
 0x2a6   :  { %1942 = vlog2.f32 %v1288_v15 }
 0x2a7   :  { %v1399_v16 = vsub.f32 %v2625_v2, %v1350_v25 }
 0x2a9   :  { %1431 = vst [vmem:[%s2815_s6 + $0x70] sm:$0xff] %v1399_v16 }
 0x2ac   :  { %v1943_v0 = vpop.eup %1942 }
 0x2ad   :  { %v1290_v36 = vpop.xlane.xlu0 %1289  ;;  %v1352_v4 = vmul.f32 0.6931472, %v1943_v0 }
 0x2ae   :  { %1944 = vlog2.f32 %v1290_v36 }
 0x2af   :  { %v1400_v9 = vsub.f32 %v2631_v27, %v1352_v4 }
 0x2b0   :  { %v1292_v24 = vpop.xlane.xlu1 %1291 }
 0x2b1   :  { %1946 = vlog2.f32 %v1292_v24  ;;  %1432 = vst [vmem:[%s2815_s6 + $0x78] sm:$0xff] %v1400_v9 }
 0x2b4   :  { %v1945_v37 = vpop.eup %1944 }
 0x2b5   :  { %v1354_v44 = vmul.f32 0.6931472, %v1945_v37 }
 0x2b7   :  { %v1947_v2 = vpop.eup %1946  ;;  %v1401_v6 = vsub.f32 %v2635_v12, %v1354_v44 }
 0x2b8   :  { %v1356_v60 = vmul.f32 0.6931472, %v1947_v2  ;;  %v1294_v29 = vpop.xlane.xlu2 %1293 }
 0x2b9   :  { %1433 = vst [vmem:[%s2815_s6 + $0x80] sm:$0xff] %v1401_v6  ;;  %1948 = vlog2.f32 %v1294_v29 }
 0x2ba   :  { %v1402_v27 = vsub.f32 %v2640_v46, %v1356_v60 }
 0x2bc   :  { %1434 = vst [vmem:[%s2815_s6 + $0x88] sm:$0xff] %v1402_v27 }
 0x2bf   :  { %v1949_v32 = vpop.eup %1948 }
 0x2c0   :  { %v1358_v48 = vmul.f32 0.6931472, %v1949_v32  ;;  %v1296_v11 = vpop.xlane.xlu0 %1295 }
 0x2c1   :  { %1950 = vlog2.f32 %v1296_v11 }
 0x2c2   :  { %v1403_v8 = vsub.f32 %v2648_v10, %v1358_v48 }
 0x2c4   :  { %1435 = vst [vmem:[%s2815_s6 + $0x90] sm:$0xff] %v1403_v8 }
 0x2c7   :  { %v1951_v12 = vpop.eup %1950 }
 0x2c8   :  { %v1360_v34 = vmul.f32 0.6931472, %v1951_v12  ;;  %v1298_v39 = vpop.xlane.xlu1 %1297 }
 0x2c9   :  { %1952 = vlog2.f32 %v1298_v39 }
 0x2ca   :  { %v1404_v46 = vsub.f32 %v2656_v21, %v1360_v34 }
 0x2cc   :  { %1436 = vst [vmem:[%s2815_s6 + $0x98] sm:$0xff] %v1404_v46 }
 0x2cf   :  { %v1953_v41 = vpop.eup %1952 }
 0x2d0   :  { %v1362_v40 = vmul.f32 0.6931472, %v1953_v41  ;;  %v1300_v42 = vpop.xlane.xlu2 %1299 }
 0x2d1   :  { %1954 = vlog2.f32 %v1300_v42 }
 0x2d2   :  { %v1405_v10 = vsub.f32 %v2664_v14, %v1362_v40 }
 0x2d4   :  { %1437 = vst [vmem:[%s2815_s6 + $0xa0] sm:$0xff] %v1405_v10 }
 0x2d7   :  { %v1955_v20 = vpop.eup %1954 }
 0x2d8   :  { %v1364_v17 = vmul.f32 0.6931472, %v1955_v20  ;;  %v1318_v5 = vpop.xlane.xlu2 %1317  ;;  %v1302_v51 = vpop.xlane.xlu0 %1301 }
 0x2d9   :  { %1956 = vlog2.f32 %v1318_v5 }
 0x2da   :  { %v1406_v21 = vsub.f32 %v2672_v18, %v1364_v17  ;;  %1958 = vlog2.f32 %v1302_v51 }
 0x2dc   :  { %1438 = vst [vmem:[%s2815_s6 + $0xa8] sm:$0xff] %v1406_v21 }
 0x2df   :  { %v1957_v28 = vpop.eup %1956 }
 0x2e0   :  { %v1959_v58 = vpop.eup %1958  ;;  %v1382_v54 = vmul.f32 0.6931472, %v1957_v28  ;;  %v1304_v14 = vpop.xlane.xlu1 %1303 }
 0x2e1   :  { %v1320_v23 = vpop.xlane.xlu0 %1319  ;;  %v1366_v61 = vmul.f32 0.6931472, %v1959_v58  ;;  %1960 = vlog2.f32 %v1304_v14 }
 0x2e2   :  { %v1415_v53 = vsub.f32 %v2680_v1, %v1382_v54  ;;  %1962 = vlog2.f32 %v1320_v23 }
 0x2e3   :  { %v1407_v47 = vsub.f32 %v2685_v52, %v1366_v61 }
 0x2e4   :  { %1447 = vst [vmem:[%s2815_s6 + $0xf0] sm:$0xff] %v1415_v53 }
 0x2e5   :  { %1439 = vst [vmem:[%s2815_s6 + $0xb0] sm:$0xff] %v1407_v47 }
 0x2e7   :  { %v1961_v18 = vpop.eup %1960 }
 0x2e8   :  { %v1963_v26 = vpop.eup %1962  ;;  %v1368_v49 = vmul.f32 0.6931472, %v1961_v18  ;;  %v1316_v35 = vpop.xlane.xlu1 %1315 }
 0x2e9   :  { %v1384_v63 = vmul.f32 0.6931472, %v1963_v26  ;;  %1964 = vlog2.f32 %v1316_v35 }
 0x2ea   :  { %v1408_v57 = vsub.f32 %v2698_v3, %v1368_v49 }
 0x2eb   :  { %v1416_v1 = vsub.f32 %v2693_v22, %v1384_v63 }
 0x2ec   :  { %1440 = vst [vmem:[%s2815_s6 + $0xb8] sm:$0xff] %v1408_v57 }
 0x2ed   :  { %1448 = vst [vmem:[%s2815_s6 + $0xf8] sm:$0xff] %v1416_v1 }
 0x2ef   :  { %v1965_v52 = vpop.eup %1964 }
 0x2f0   :  { %v1380_v33 = vmul.f32 0.6931472, %v1965_v52 }
 0x2f2   :  { %v1414_v62 = vsub.f32 %v2706_v38, %v1380_v33 }
 0x2f4   :  { %1446 = vst [vmem:[%s2815_s6 + $0xe8] sm:$0xff] %v1414_v62 }

</bundles_post_ra>
